<compile_context>
chip_gen: v6e
topology: v6e:2x2x1
jax: 0.10.0
libtpu: 0.0.40
codegen_flags: <defaults>
</compile_context>

<pallas_src>
import functools
import math

import jax
import jax.numpy as jnp
from jax.experimental import pallas as pl
from jax.experimental.pallas import tpu as pltpu

# ----------------------------- configuration -------------------------------
BATCH      = 2
SEQ        = 8
INPUT_DIM  = 16
HIDDEN_DIM = 32
OUTPUT_DIM = 4
NUM_LAYERS = 2
NUM_HEADS  = 4
DIM_FF     = 2048          # nn.TransformerEncoderLayer default dim_feedforward
LN_EPS     = 1e-5          # nn.LayerNorm default eps
NVEC       = 9             # packed per-layer vectors: bq bk bv ob ln1w ln1b ln2w ln2b ff2b


# ------------------------------- kernel ------------------------------------
def transformer_agent_kernel(
    x_ref,                                   # (B, S, Din)              const
    emb_w_ref, emb_b_ref,                    # (Din, H), (1, H)         const
    attn_w_ref,                              # (1, 4, H, H)  [wq wk wv ow]  per layer
    vec_ref,                                 # (1, NVEC, H)             per layer
    ff1_w_ref, ff1_b_ref,                    # (1, H, Dff), (1, 1, Dff) per layer
    ff2_wt_ref,                              # (1, H, Dff)  transposed  per layer
    fcw_ref, fcb_ref,                        # (H, Dout), (1, Dout)     const
    o_ref,                                   # (B, Dout)
    h_ref,                                   # VMEM scratch (B*S, H) carried across layers
    *, num_heads, eps):
  l = pl.program_id(0)
  B, S, Din = x_ref.shape
  BS, H = h_ref.shape
  dh = H // num_heads
  scale = 1.0 / math.sqrt(dh)

  def layer_norm(h, w, b):
    mu = jnp.mean(h, axis=-1, keepdims=True)
    var = jnp.mean((h - mu) ** 2, axis=-1, keepdims=True)
    return (h - mu) * jax.lax.rsqrt(var + eps) * w + b

  # ---- embedding (first grid step only); h lives in VMEM scratch ----
  @pl.when(l == 0)
  def _():
    x2 = x_ref[...].reshape(BS, Din)
    h_ref[...] = (jnp.dot(x2, emb_w_ref[...], preferred_element_type=jnp.float32)
                  + emb_b_ref[...])
    o_ref[...] = jnp.zeros_like(o_ref)   # insurance: output block is grid-resident

  h = h_ref[...]

  # ---- unpack the per-layer small vectors (one DMA) ----
  vec = vec_ref[0]                       # (NVEC, H)
  bq   = vec[0:1, :]
  bk   = vec[1:2, :]
  bv   = vec[2:3, :]
  ob   = vec[3:4, :]
  ln1w = vec[4:5, :]
  ln1b = vec[5:6, :]
  ln2w = vec[6:7, :]
  ln2b = vec[7:8, :]
  ff2b = vec[8:9, :]

  # ---- self-attention (post-norm): 3 full (H,H) QKV matmuls + 1 out-proj ----
  wq = attn_w_ref[0, 0]
  wk = attn_w_ref[0, 1]
  wv = attn_w_ref[0, 2]
  ow = attn_w_ref[0, 3]

  q = (jnp.dot(h, wq, preferred_element_type=jnp.float32) + bq) * scale  # (BS, H)
  k = jnp.dot(h, wk, preferred_element_type=jnp.float32) + bk            # (BS, H)
  v = jnp.dot(h, wv, preferred_element_type=jnp.float32) + bv            # (BS, H)

  head_outs = []
  for hd in range(num_heads):
    c0, c1 = hd * dh, (hd + 1) * dh
    qh = q[:, c0:c1].reshape(B, S, dh)
    kh = k[:, c0:c1].reshape(B, S, dh)
    vh = v[:, c0:c1].reshape(B, S, dh)
    s = jnp.einsum("bqd,bkd->bqk", qh, kh, preferred_element_type=jnp.float32)
    s = s - jnp.max(s, axis=-1, keepdims=True)
    p = jnp.exp(s)
    p = p / jnp.sum(p, axis=-1, keepdims=True)   # exact div to keep 1e-4 vs f32 ref
    oh = jnp.einsum("bqk,bkd->bqd", p, vh, preferred_element_type=jnp.float32)
    head_outs.append(oh.reshape(BS, dh))
  attn = jnp.concatenate(head_outs, axis=-1)                          # (BS, H)
  attn = jnp.dot(attn, ow, preferred_element_type=jnp.float32) + ob   # out projection

  # dropout layers are identity (eval-mode semantics)
  h = layer_norm(h + attn, ln1w, ln1b)

  # ---- feed-forward (ff2 weight stored transposed / lane-dense) ----
  ff = jnp.dot(h, ff1_w_ref[0], preferred_element_type=jnp.float32) + ff1_b_ref[0]
  ff = jnp.maximum(ff, 0.0)                                   # ReLU (default activation)
  ff = jax.lax.dot_general(ff, ff2_wt_ref[0],
                           dimension_numbers=(((1,), (1,)), ((), ())),
                           preferred_element_type=jnp.float32) + ff2b
  h = layer_norm(h + ff, ln2w, ln2b)

  h_ref[...] = h

  # ---- final fc on the last sequence position (last grid step only) ----
  @pl.when(l == pl.num_programs(0) - 1)
  def _():
    h_last = h_ref[pl.ds(S - 1, B, stride=S), :]               # rows S-1, 2S-1, ... -> (B, H)
    o_ref[...] = (jnp.dot(h_last, fcw_ref[...], preferred_element_type=jnp.float32)
                  + fcb_ref[...])


# ------------------------------- wrapper ------------------------------------
def transformer_agent_forward(x, params):
  B, S, Din = x.shape
  H, Dout = HIDDEN_DIM, OUTPUT_DIM
  L, Dff = NUM_LAYERS, DIM_FF

  def const_spec(shape):
    nd = len(shape)
    return pl.BlockSpec(shape, lambda l, nd=nd: (0,) * nd)

  def layer_spec(shape):          # shape without the leading L axis
    nd = len(shape)
    return pl.BlockSpec((1,) + shape, lambda l, nd=nd: (l,) + (0,) * nd)

  in_specs = [
      const_spec((B, S, Din)),                                  # x
      const_spec((Din, H)), const_spec((1, H)),                 # embedding
      layer_spec((4, H, H)),                                    # packed wq/wk/wv/ow
      layer_spec((NVEC, H)),                                    # packed small vectors
      layer_spec((H, Dff)), layer_spec((1, Dff)),               # ff1 w, b
      layer_spec((H, Dff)),                                     # ff2 w (transposed)
      const_spec((H, Dout)), const_spec((1, Dout)),             # fc w, b
  ]
  args = (
      x,
      params["emb_w"], params["emb_b"],
      params["attn_w"],
      params["vec"],
      params["ff1_w"], params["ff1_b"],
      params["ff2_wt"],
      params["fc_w"], params["fc_b"],
  )
  kernel = functools.partial(transformer_agent_kernel,
                             num_heads=NUM_HEADS, eps=LN_EPS)
  return pl.pallas_call(
      kernel,
      out_shape=jax.ShapeDtypeStruct((B, Dout), jnp.float32),
      grid_spec=pltpu.PrefetchScalarGridSpec(
          num_scalar_prefetch=0,
          grid=(L,),
          in_specs=in_specs,
          out_specs=pl.BlockSpec((B, Dout), lambda l: (0, 0)),
          scratch_shapes=[pltpu.VMEM((B * S, H), jnp.float32)]),
      compiler_params=pltpu.CompilerParams(
          dimension_semantics=("arbitrary",)),
  )(*args)


# ------------------------- pure-JAX reference -------------------------------
def reference_forward(x, params):
  B, S, Din = x.shape
  H, NH = HIDDEN_DIM, NUM_HEADS
  dh = H // NH
  scale = 1.0 / math.sqrt(dh)

  def layer_norm(h, w, b):
    mu = jnp.mean(h, axis=-1, keepdims=True)
    var = jnp.mean((h - mu) ** 2, axis=-1, keepdims=True)
    return (h - mu) * jax.lax.rsqrt(var + LN_EPS) * w + b

  h = x.reshape(B * S, Din) @ params["emb_w"] + params["emb_b"]
  for l in range(NUM_LAYERS):
    aw = params["attn_w"][l]            # (4, H, H)  [wq, wk, wv, ow]
    vec = params["vec"][l]              # (NVEC, H)
    bq, bk, bv, ob = vec[0], vec[1], vec[2], vec[3]
    ln1w, ln1b, ln2w, ln2b, ff2b = vec[4], vec[5], vec[6], vec[7], vec[8]

    q = ((h @ aw[0] + bq) * scale).reshape(B, S, NH, dh)
    k = (h @ aw[1] + bk).reshape(B, S, NH, dh)
    v = (h @ aw[2] + bv).reshape(B, S, NH, dh)
    scores = jnp.einsum("bqhd,bkhd->bhqk", q, k)
    p = jax.nn.softmax(scores, axis=-1)
    attn = jnp.einsum("bhqk,bkhd->bqhd", p, v).reshape(B * S, H)
    attn = attn @ aw[3] + ob
    h = layer_norm(h + attn, ln1w, ln1b)

    ff = jnp.maximum(h @ params["ff1_w"][l] + params["ff1_b"][l], 0.0)
    ff = ff @ params["ff2_wt"][l].T + ff2b
    h = layer_norm(h + ff, ln2w, ln2b)
  h_last = h.reshape(B, S, H)[:, -1, :]
  return h_last @ params["fc_w"] + params["fc_b"]


# ------------------------------- params -------------------------------------
def make_params(key):
  L, H, Dff = NUM_LAYERS, HIDDEN_DIM, DIM_FF
  ks = jax.random.split(key, 14)

  def w(k, shape, s=0.08):
    return jax.random.normal(k, shape, jnp.float32) * s

  # packed per-layer vectors: rows [bq, bk, bv, ob, ln1_w, ln1_b, ln2_w, ln2_b, ff2_b]
  vec = jnp.zeros((L, NVEC, H), jnp.float32)
  vec = vec.at[:, 0:4].set(w(ks[3], (L, 4, H)))                 # bq, bk, bv, ob
  vec = vec.at[:, 4].set(1.0 + w(ks[4], (L, H), 0.02))          # ln1_w
  vec = vec.at[:, 5].set(w(ks[5], (L, H), 0.02))                # ln1_b
  vec = vec.at[:, 6].set(1.0 + w(ks[6], (L, H), 0.02))          # ln2_w
  vec = vec.at[:, 7].set(w(ks[7], (L, H), 0.02))                # ln2_b
  vec = vec.at[:, 8].set(w(ks[8], (L, H)))                      # ff2_b

  return {
      "emb_w":  w(ks[0], (INPUT_DIM, H)),
      "emb_b":  w(ks[1], (1, H)),
      "attn_w": w(ks[2], (L, 4, H, H)),            # [wq, wk, wv, ow] per layer
      "vec":    vec,
      "ff1_w":  w(ks[9],  (L, H, Dff)),
      "ff1_b":  w(ks[10], (L, 1, Dff)),
      "ff2_wt": w(ks[11], (L, H, Dff)),            # transposed / lane-dense layout
      "fc_w":   w(ks[12], (H, OUTPUT_DIM)),
      "fc_b":   w(ks[13], (1, OUTPUT_DIM)),
  }


# ------------------------------- main ---------------------------------------
if __name__ == "__main__":
  key = jax.random.PRNGKey(0)
  kx, kp = jax.random.split(key)
  x = jax.random.normal(kx, (BATCH, SEQ, INPUT_DIM), jnp.float32)
  params = make_params(kp)

  out = jax.block_until_ready(transformer_agent_forward(x, params))
  ref = jax.block_until_ready(reference_forward(x, params))

  assert out.shape == (BATCH, OUTPUT_DIM), out.shape
  assert jnp.allclose(out, ref, atol=1e-4, rtol=1e-4), (out, ref)
  print("KERNEL_OK")
</pallas_src>

<mosaic_0001>
module attributes {stable_mosaic.version = 11 : i64} {
  func.func @transformer_agent_kernel(%arg0: i32, %arg1: memref<2x8x16xf32, #tpu.memory_space<vmem>>, %arg2: memref<16x32xf32, #tpu.memory_space<vmem>>, %arg3: memref<1x32xf32, #tpu.memory_space<vmem>>, %arg4: memref<1x4x32x32xf32, #tpu.memory_space<vmem>>, %arg5: memref<1x9x32xf32, #tpu.memory_space<vmem>>, %arg6: memref<1x32x2048xf32, #tpu.memory_space<vmem>>, %arg7: memref<1x1x2048xf32, #tpu.memory_space<vmem>>, %arg8: memref<1x32x2048xf32, #tpu.memory_space<vmem>>, %arg9: memref<32x4xf32, #tpu.memory_space<vmem>>, %arg10: memref<1x4xf32, #tpu.memory_space<vmem>>, %arg11: memref<2x4xf32, #tpu.memory_space<vmem>>, %arg12: memref<16x32xf32, #tpu.memory_space<vmem>>) attributes {dimension_semantics = [#tpu.dimension_semantics<arbitrary>], iteration_bounds = array<i64: 2>, scalar_prefetch = 0 : i64, scratch_operands = 1 : i64, tpu.core_type = #tpu.core_type<tc>, window_params = [{pipeline_mode = #tpu.pipeline_mode<synchronous>, transform_indices = @transform_0, window_bounds = array<i64: 2, 8, 16>}, {pipeline_mode = #tpu.pipeline_mode<synchronous>, transform_indices = @transform_1, window_bounds = array<i64: 16, 32>}, {pipeline_mode = #tpu.pipeline_mode<synchronous>, transform_indices = @transform_2, window_bounds = array<i64: 1, 32>}, {transform_indices = @transform_3, window_bounds = array<i64: 1, 4, 32, 32>}, {transform_indices = @transform_4, window_bounds = array<i64: 1, 9, 32>}, {transform_indices = @transform_5, window_bounds = array<i64: 1, 32, 2048>}, {transform_indices = @transform_6, window_bounds = array<i64: 1, 1, 2048>}, {transform_indices = @transform_7, window_bounds = array<i64: 1, 32, 2048>}, {pipeline_mode = #tpu.pipeline_mode<synchronous>, transform_indices = @transform_8, window_bounds = array<i64: 32, 4>}, {pipeline_mode = #tpu.pipeline_mode<synchronous>, transform_indices = @transform_9, window_bounds = array<i64: 1, 4>}, {pipeline_mode = #tpu.pipeline_mode<synchronous>, transform_indices = @transform_10, window_bounds = array<i64: 2, 4>}]} {
    %c0_i32 = arith.constant 0 : i32
    %0 = arith.cmpi eq, %arg0, %c0_i32 : i32
    %1 = arith.extui %0 : i1 to i32
    %c0_i32_0 = arith.constant 0 : i32
    %2 = arith.cmpi ne, %1, %c0_i32_0 : i32
    scf.if %2 {
      %c0_63 = arith.constant 0 : index
      %c0_64 = arith.constant 0 : index
      %c0_65 = arith.constant 0 : index
      %174 = vector.load %arg1[%c0_63, %c0_64, %c0_65] : memref<2x8x16xf32, #tpu.memory_space<vmem>>, vector<2x8x16xf32>
      %175 = vector.shape_cast %174 : vector<2x8x16xf32> to vector<16x16xf32>
      %c0_66 = arith.constant 0 : index
      %c0_67 = arith.constant 0 : index
      %176 = vector.load %arg2[%c0_66, %c0_67] : memref<16x32xf32, #tpu.memory_space<vmem>>, vector<16x32xf32>
      %cst_68 = arith.constant dense<0.000000e+00> : vector<16x32xf32>
      %177 = tpu.matmul %175, %176, %cst_68 {dimension_numbers = #tpu.dot_dimension_numbers<[1], [0], [0], [1], [0, 0, 1, 1], [], []>} : vector<16x16xf32>, vector<16x32xf32>, vector<16x32xf32> -> vector<16x32xf32>
      %c0_69 = arith.constant 0 : index
      %c0_70 = arith.constant 0 : index
      %178 = vector.load %arg3[%c0_69, %c0_70] : memref<1x32xf32, #tpu.memory_space<vmem>>, vector<1x32xf32>
      %179 = vector.broadcast %178 : vector<1x32xf32> to vector<16x32xf32>
      %180 = arith.addf %177, %179 : vector<16x32xf32>
      %c0_71 = arith.constant 0 : index
      %c0_72 = arith.constant 0 : index
      %181 = vector.load %arg12[%c0_71, %c0_72] : memref<16x32xf32, #tpu.memory_space<vmem>>, vector<16x32xf32>
      tpu.vector_store %arg12[%c0_71, %c0_72], %180 {strides = array<i32>} : memref<16x32xf32, #tpu.memory_space<vmem>>, vector<16x32xf32>,
      %cst_73 = arith.constant 0.000000e+00 : f32
      %182 = vector.broadcast %cst_73 : f32 to vector<2x4xf32>
      %c0_74 = arith.constant 0 : index
      %c0_75 = arith.constant 0 : index
      %183 = vector.load %arg11[%c0_74, %c0_75] : memref<2x4xf32, #tpu.memory_space<vmem>>, vector<2x4xf32>
      tpu.vector_store %arg11[%c0_74, %c0_75], %182 {strides = array<i32>} : memref<2x4xf32, #tpu.memory_space<vmem>>, vector<2x4xf32>,
    } else {
    }
    %c0 = arith.constant 0 : index
    %c0_1 = arith.constant 0 : index
    %3 = vector.load %arg12[%c0, %c0_1] : memref<16x32xf32, #tpu.memory_space<vmem>>, vector<16x32xf32>
    %c0_2 = arith.constant 0 : index
    %c0_3 = arith.constant 0 : index
    %c0_4 = arith.constant 0 : index
    %4 = vector.load %arg5[%c0_2, %c0_3, %c0_4] : memref<1x9x32xf32, #tpu.memory_space<vmem>>, vector<1x9x32xf32>
    %5 = vector.shape_cast %4 : vector<1x9x32xf32> to vector<9x32xf32>
    %6 = vector.extract_strided_slice %5 {offsets = [0, 0], sizes = [1, 32], strides = [1, 1]} : vector<9x32xf32> to vector<1x32xf32>
    %7 = vector.extract_strided_slice %5 {offsets = [1, 0], sizes = [1, 32], strides = [1, 1]} : vector<9x32xf32> to vector<1x32xf32>
    %8 = vector.extract_strided_slice %5 {offsets = [2, 0], sizes = [1, 32], strides = [1, 1]} : vector<9x32xf32> to vector<1x32xf32>
    %9 = vector.extract_strided_slice %5 {offsets = [3, 0], sizes = [1, 32], strides = [1, 1]} : vector<9x32xf32> to vector<1x32xf32>
    %10 = vector.extract_strided_slice %5 {offsets = [4, 0], sizes = [1, 32], strides = [1, 1]} : vector<9x32xf32> to vector<1x32xf32>
    %11 = vector.extract_strided_slice %5 {offsets = [5, 0], sizes = [1, 32], strides = [1, 1]} : vector<9x32xf32> to vector<1x32xf32>
    %12 = vector.extract_strided_slice %5 {offsets = [6, 0], sizes = [1, 32], strides = [1, 1]} : vector<9x32xf32> to vector<1x32xf32>
    %13 = vector.extract_strided_slice %5 {offsets = [7, 0], sizes = [1, 32], strides = [1, 1]} : vector<9x32xf32> to vector<1x32xf32>
    %14 = vector.extract_strided_slice %5 {offsets = [8, 0], sizes = [1, 32], strides = [1, 1]} : vector<9x32xf32> to vector<1x32xf32>
    %c0_5 = arith.constant 0 : index
    %c0_6 = arith.constant 0 : index
    %c0_7 = arith.constant 0 : index
    %c0_8 = arith.constant 0 : index
    %15 = vector.load %arg4[%c0_5, %c0_6, %c0_7, %c0_8] : memref<1x4x32x32xf32, #tpu.memory_space<vmem>>, vector<1x1x32x32xf32>
    %16 = vector.shape_cast %15 : vector<1x1x32x32xf32> to vector<32x32xf32>
    %c0_9 = arith.constant 0 : index
    %c1 = arith.constant 1 : index
    %c0_10 = arith.constant 0 : index
    %c0_11 = arith.constant 0 : index
    %17 = vector.load %arg4[%c0_9, %c1, %c0_10, %c0_11] : memref<1x4x32x32xf32, #tpu.memory_space<vmem>>, vector<1x1x32x32xf32>
    %18 = vector.shape_cast %17 : vector<1x1x32x32xf32> to vector<32x32xf32>
    %c0_12 = arith.constant 0 : index
    %c2 = arith.constant 2 : index
    %c0_13 = arith.constant 0 : index
    %c0_14 = arith.constant 0 : index
    %19 = vector.load %arg4[%c0_12, %c2, %c0_13, %c0_14] : memref<1x4x32x32xf32, #tpu.memory_space<vmem>>, vector<1x1x32x32xf32>
    %20 = vector.shape_cast %19 : vector<1x1x32x32xf32> to vector<32x32xf32>
    %c0_15 = arith.constant 0 : index
    %c3 = arith.constant 3 : index
    %c0_16 = arith.constant 0 : index
    %c0_17 = arith.constant 0 : index
    %21 = vector.load %arg4[%c0_15, %c3, %c0_16, %c0_17] : memref<1x4x32x32xf32, #tpu.memory_space<vmem>>, vector<1x1x32x32xf32>
    %22 = vector.shape_cast %21 : vector<1x1x32x32xf32> to vector<32x32xf32>
    %cst = arith.constant dense<0.000000e+00> : vector<16x32xf32>
    %23 = tpu.matmul %3, %16, %cst {dimension_numbers = #tpu.dot_dimension_numbers<[1], [0], [0], [1], [0, 0, 1, 1], [], []>} : vector<16x32xf32>, vector<32x32xf32>, vector<16x32xf32> -> vector<16x32xf32>
    %24 = vector.broadcast %6 : vector<1x32xf32> to vector<16x32xf32>
    %25 = arith.addf %23, %24 : vector<16x32xf32>
    %cst_18 = arith.constant 0.353553385 : f32
    %26 = vector.broadcast %cst_18 : f32 to vector<16x32xf32>
    %27 = arith.mulf %25, %26 : vector<16x32xf32>
    %cst_19 = arith.constant dense<0.000000e+00> : vector<16x32xf32>
    %28 = tpu.matmul %3, %18, %cst_19 {dimension_numbers = #tpu.dot_dimension_numbers<[1], [0], [0], [1], [0, 0, 1, 1], [], []>} : vector<16x32xf32>, vector<32x32xf32>, vector<16x32xf32> -> vector<16x32xf32>
    %29 = vector.broadcast %7 : vector<1x32xf32> to vector<16x32xf32>
    %30 = arith.addf %28, %29 : vector<16x32xf32>
    %cst_20 = arith.constant dense<0.000000e+00> : vector<16x32xf32>
    %31 = tpu.matmul %3, %20, %cst_20 {dimension_numbers = #tpu.dot_dimension_numbers<[1], [0], [0], [1], [0, 0, 1, 1], [], []>} : vector<16x32xf32>, vector<32x32xf32>, vector<16x32xf32> -> vector<16x32xf32>
    %32 = vector.broadcast %8 : vector<1x32xf32> to vector<16x32xf32>
    %33 = arith.addf %31, %32 : vector<16x32xf32>
    %34 = vector.extract_strided_slice %27 {offsets = [0, 0], sizes = [16, 8], strides = [1, 1]} : vector<16x32xf32> to vector<16x8xf32>
    %35 = vector.shape_cast %34 : vector<16x8xf32> to vector<2x8x8xf32>
    %36 = vector.extract_strided_slice %30 {offsets = [0, 0], sizes = [16, 8], strides = [1, 1]} : vector<16x32xf32> to vector<16x8xf32>
    %37 = vector.shape_cast %36 : vector<16x8xf32> to vector<2x8x8xf32>
    %38 = vector.extract_strided_slice %33 {offsets = [0, 0], sizes = [16, 8], strides = [1, 1]} : vector<16x32xf32> to vector<16x8xf32>
    %39 = vector.shape_cast %38 : vector<16x8xf32> to vector<2x8x8xf32>
    "tpu.trace_start"() <{level = 10 : i32, message = "bqd,bkd->bqk"}> : () -> ()
    %cst_21 = arith.constant dense<0.000000e+00> : vector<2x8x8xf32>
    %40 = tpu.matmul %35, %37, %cst_21 {dimension_numbers = #tpu.dot_dimension_numbers<[2], [2], [1], [1], [0, 0, 0, 1, 1, 1], [0], [0]>} : vector<2x8x8xf32>, vector<2x8x8xf32>, vector<2x8x8xf32> -> vector<2x8x8xf32>
    "tpu.trace_stop"() : () -> ()
    %cst_22 = arith.constant dense<0xFF800000> : vector<2x8xf32>
    %41 = vector.multi_reduction <maximumf>, %40, %cst_22 [2] : vector<2x8x8xf32> to vector<2x8xf32>
    %42 = vector.shape_cast %41 : vector<2x8xf32> to vector<2x8x1xf32>
    %43 = vector.broadcast %42 : vector<2x8x1xf32> to vector<2x8x8xf32>
    %44 = arith.subf %40, %43 : vector<2x8x8xf32>
    %45 = math.exp %44 : vector<2x8x8xf32>
    %cst_23 = arith.constant dense<0.000000e+00> : vector<2x8xf32>
    %46 = vector.multi_reduction <add>, %45, %cst_23 [2] : vector<2x8x8xf32> to vector<2x8xf32>
    %47 = vector.shape_cast %46 : vector<2x8xf32> to vector<2x8x1xf32>
    %48 = vector.broadcast %47 : vector<2x8x1xf32> to vector<2x8x8xf32>
    %49 = arith.divf %45, %48 : vector<2x8x8xf32>
    "tpu.trace_start"() <{level = 10 : i32, message = "bqk,bkd->bqd"}> : () -> ()
    %cst_24 = arith.constant dense<0.000000e+00> : vector<2x8x8xf32>
    %50 = tpu.matmul %49, %39, %cst_24 {dimension_numbers = #tpu.dot_dimension_numbers<[2], [1], [1], [2], [0, 0, 0, 1, 1, 2], [0], [0]>} : vector<2x8x8xf32>, vector<2x8x8xf32>, vector<2x8x8xf32> -> vector<2x8x8xf32>
    "tpu.trace_stop"() : () -> ()
    %51 = vector.shape_cast %50 : vector<2x8x8xf32> to vector<16x8xf32>
    %52 = vector.extract_strided_slice %27 {offsets = [0, 8], sizes = [16, 8], strides = [1, 1]} : vector<16x32xf32> to vector<16x8xf32>
    %53 = vector.shape_cast %52 : vector<16x8xf32> to vector<2x8x8xf32>
    %54 = vector.extract_strided_slice %30 {offsets = [0, 8], sizes = [16, 8], strides = [1, 1]} : vector<16x32xf32> to vector<16x8xf32>
    %55 = vector.shape_cast %54 : vector<16x8xf32> to vector<2x8x8xf32>
    %56 = vector.extract_strided_slice %33 {offsets = [0, 8], sizes = [16, 8], strides = [1, 1]} : vector<16x32xf32> to vector<16x8xf32>
    %57 = vector.shape_cast %56 : vector<16x8xf32> to vector<2x8x8xf32>
    "tpu.trace_start"() <{level = 10 : i32, message = "bqd,bkd->bqk"}> : () -> ()
    %cst_25 = arith.constant dense<0.000000e+00> : vector<2x8x8xf32>
    %58 = tpu.matmul %53, %55, %cst_25 {dimension_numbers = #tpu.dot_dimension_numbers<[2], [2], [1], [1], [0, 0, 0, 1, 1, 1], [0], [0]>} : vector<2x8x8xf32>, vector<2x8x8xf32>, vector<2x8x8xf32> -> vector<2x8x8xf32>
    "tpu.trace_stop"() : () -> ()
    %cst_26 = arith.constant dense<0xFF800000> : vector<2x8xf32>
    %59 = vector.multi_reduction <maximumf>, %58, %cst_26 [2] : vector<2x8x8xf32> to vector<2x8xf32>
    %60 = vector.shape_cast %59 : vector<2x8xf32> to vector<2x8x1xf32>
    %61 = vector.broadcast %60 : vector<2x8x1xf32> to vector<2x8x8xf32>
    %62 = arith.subf %58, %61 : vector<2x8x8xf32>
    %63 = math.exp %62 : vector<2x8x8xf32>
    %cst_27 = arith.constant dense<0.000000e+00> : vector<2x8xf32>
    %64 = vector.multi_reduction <add>, %63, %cst_27 [2] : vector<2x8x8xf32> to vector<2x8xf32>
    %65 = vector.shape_cast %64 : vector<2x8xf32> to vector<2x8x1xf32>
    %66 = vector.broadcast %65 : vector<2x8x1xf32> to vector<2x8x8xf32>
    %67 = arith.divf %63, %66 : vector<2x8x8xf32>
    "tpu.trace_start"() <{level = 10 : i32, message = "bqk,bkd->bqd"}> : () -> ()
    %cst_28 = arith.constant dense<0.000000e+00> : vector<2x8x8xf32>
    %68 = tpu.matmul %67, %57, %cst_28 {dimension_numbers = #tpu.dot_dimension_numbers<[2], [1], [1], [2], [0, 0, 0, 1, 1, 2], [0], [0]>} : vector<2x8x8xf32>, vector<2x8x8xf32>, vector<2x8x8xf32> -> vector<2x8x8xf32>
    "tpu.trace_stop"() : () -> ()
    %69 = vector.shape_cast %68 : vector<2x8x8xf32> to vector<16x8xf32>
    %70 = vector.extract_strided_slice %27 {offsets = [0, 16], sizes = [16, 8], strides = [1, 1]} : vector<16x32xf32> to vector<16x8xf32>
    %71 = vector.shape_cast %70 : vector<16x8xf32> to vector<2x8x8xf32>
    %72 = vector.extract_strided_slice %30 {offsets = [0, 16], sizes = [16, 8], strides = [1, 1]} : vector<16x32xf32> to vector<16x8xf32>
    %73 = vector.shape_cast %72 : vector<16x8xf32> to vector<2x8x8xf32>
    %74 = vector.extract_strided_slice %33 {offsets = [0, 16], sizes = [16, 8], strides = [1, 1]} : vector<16x32xf32> to vector<16x8xf32>
    %75 = vector.shape_cast %74 : vector<16x8xf32> to vector<2x8x8xf32>
    "tpu.trace_start"() <{level = 10 : i32, message = "bqd,bkd->bqk"}> : () -> ()
    %cst_29 = arith.constant dense<0.000000e+00> : vector<2x8x8xf32>
    %76 = tpu.matmul %71, %73, %cst_29 {dimension_numbers = #tpu.dot_dimension_numbers<[2], [2], [1], [1], [0, 0, 0, 1, 1, 1], [0], [0]>} : vector<2x8x8xf32>, vector<2x8x8xf32>, vector<2x8x8xf32> -> vector<2x8x8xf32>
    "tpu.trace_stop"() : () -> ()
    %cst_30 = arith.constant dense<0xFF800000> : vector<2x8xf32>
    %77 = vector.multi_reduction <maximumf>, %76, %cst_30 [2] : vector<2x8x8xf32> to vector<2x8xf32>
    %78 = vector.shape_cast %77 : vector<2x8xf32> to vector<2x8x1xf32>
    %79 = vector.broadcast %78 : vector<2x8x1xf32> to vector<2x8x8xf32>
    %80 = arith.subf %76, %79 : vector<2x8x8xf32>
    %81 = math.exp %80 : vector<2x8x8xf32>
    %cst_31 = arith.constant dense<0.000000e+00> : vector<2x8xf32>
    %82 = vector.multi_reduction <add>, %81, %cst_31 [2] : vector<2x8x8xf32> to vector<2x8xf32>
    %83 = vector.shape_cast %82 : vector<2x8xf32> to vector<2x8x1xf32>
    %84 = vector.broadcast %83 : vector<2x8x1xf32> to vector<2x8x8xf32>
    %85 = arith.divf %81, %84 : vector<2x8x8xf32>
    "tpu.trace_start"() <{level = 10 : i32, message = "bqk,bkd->bqd"}> : () -> ()
    %cst_32 = arith.constant dense<0.000000e+00> : vector<2x8x8xf32>
    %86 = tpu.matmul %85, %75, %cst_32 {dimension_numbers = #tpu.dot_dimension_numbers<[2], [1], [1], [2], [0, 0, 0, 1, 1, 2], [0], [0]>} : vector<2x8x8xf32>, vector<2x8x8xf32>, vector<2x8x8xf32> -> vector<2x8x8xf32>
    "tpu.trace_stop"() : () -> ()
    %87 = vector.shape_cast %86 : vector<2x8x8xf32> to vector<16x8xf32>
    %88 = vector.extract_strided_slice %27 {offsets = [0, 24], sizes = [16, 8], strides = [1, 1]} : vector<16x32xf32> to vector<16x8xf32>
    %89 = vector.shape_cast %88 : vector<16x8xf32> to vector<2x8x8xf32>
    %90 = vector.extract_strided_slice %30 {offsets = [0, 24], sizes = [16, 8], strides = [1, 1]} : vector<16x32xf32> to vector<16x8xf32>
    %91 = vector.shape_cast %90 : vector<16x8xf32> to vector<2x8x8xf32>
    %92 = vector.extract_strided_slice %33 {offsets = [0, 24], sizes = [16, 8], strides = [1, 1]} : vector<16x32xf32> to vector<16x8xf32>
    %93 = vector.shape_cast %92 : vector<16x8xf32> to vector<2x8x8xf32>
    "tpu.trace_start"() <{level = 10 : i32, message = "bqd,bkd->bqk"}> : () -> ()
    %cst_33 = arith.constant dense<0.000000e+00> : vector<2x8x8xf32>
    %94 = tpu.matmul %89, %91, %cst_33 {dimension_numbers = #tpu.dot_dimension_numbers<[2], [2], [1], [1], [0, 0, 0, 1, 1, 1], [0], [0]>} : vector<2x8x8xf32>, vector<2x8x8xf32>, vector<2x8x8xf32> -> vector<2x8x8xf32>
    "tpu.trace_stop"() : () -> ()
    %cst_34 = arith.constant dense<0xFF800000> : vector<2x8xf32>
    %95 = vector.multi_reduction <maximumf>, %94, %cst_34 [2] : vector<2x8x8xf32> to vector<2x8xf32>
    %96 = vector.shape_cast %95 : vector<2x8xf32> to vector<2x8x1xf32>
    %97 = vector.broadcast %96 : vector<2x8x1xf32> to vector<2x8x8xf32>
    %98 = arith.subf %94, %97 : vector<2x8x8xf32>
    %99 = math.exp %98 : vector<2x8x8xf32>
    %cst_35 = arith.constant dense<0.000000e+00> : vector<2x8xf32>
    %100 = vector.multi_reduction <add>, %99, %cst_35 [2] : vector<2x8x8xf32> to vector<2x8xf32>
    %101 = vector.shape_cast %100 : vector<2x8xf32> to vector<2x8x1xf32>
    %102 = vector.broadcast %101 : vector<2x8x1xf32> to vector<2x8x8xf32>
    %103 = arith.divf %99, %102 : vector<2x8x8xf32>
    "tpu.trace_start"() <{level = 10 : i32, message = "bqk,bkd->bqd"}> : () -> ()
    %cst_36 = arith.constant dense<0.000000e+00> : vector<2x8x8xf32>
    %104 = tpu.matmul %103, %93, %cst_36 {dimension_numbers = #tpu.dot_dimension_numbers<[2], [1], [1], [2], [0, 0, 0, 1, 1, 2], [0], [0]>} : vector<2x8x8xf32>, vector<2x8x8xf32>, vector<2x8x8xf32> -> vector<2x8x8xf32>
    "tpu.trace_stop"() : () -> ()
    %105 = vector.shape_cast %104 : vector<2x8x8xf32> to vector<16x8xf32>
    %106 = tpu.concatenate %51, %69, %87, %105 in 1 : vector<16x8xf32>, vector<16x8xf32>, vector<16x8xf32>, vector<16x8xf32> -> vector<16x32xf32>
    %cst_37 = arith.constant dense<0.000000e+00> : vector<16x32xf32>
    %107 = tpu.matmul %106, %22, %cst_37 {dimension_numbers = #tpu.dot_dimension_numbers<[1], [0], [0], [1], [0, 0, 1, 1], [], []>} : vector<16x32xf32>, vector<32x32xf32>, vector<16x32xf32> -> vector<16x32xf32>
    %108 = vector.broadcast %9 : vector<1x32xf32> to vector<16x32xf32>
    %109 = arith.addf %107, %108 : vector<16x32xf32>
    %110 = arith.addf %3, %109 : vector<16x32xf32>
    %cst_38 = arith.constant dense<0.000000e+00> : vector<16xf32>
    %111 = vector.multi_reduction <add>, %110, %cst_38 [1] : vector<16x32xf32> to vector<16xf32>
    %112 = vector.shape_cast %111 : vector<16xf32> to vector<16x1xf32>
    %cst_39 = arith.constant 3.200000e+01 : f32
    %113 = vector.broadcast %cst_39 : f32 to vector<16x1xf32>
    %114 = arith.divf %112, %113 : vector<16x1xf32>
    %115 = vector.broadcast %114 : vector<16x1xf32> to vector<16x32xf32>
    %116 = arith.subf %110, %115 : vector<16x32xf32>
    %117 = arith.mulf %116, %116 : vector<16x32xf32>
    %cst_40 = arith.constant dense<0.000000e+00> : vector<16xf32>
    %118 = vector.multi_reduction <add>, %117, %cst_40 [1] : vector<16x32xf32> to vector<16xf32>
    %119 = vector.shape_cast %118 : vector<16xf32> to vector<16x1xf32>
    %cst_41 = arith.constant 3.200000e+01 : f32
    %120 = vector.broadcast %cst_41 : f32 to vector<16x1xf32>
    %121 = arith.divf %119, %120 : vector<16x1xf32>
    %122 = vector.broadcast %114 : vector<16x1xf32> to vector<16x32xf32>
    %123 = arith.subf %110, %122 : vector<16x32xf32>
    %cst_42 = arith.constant 9.99999974E-6 : f32
    %124 = vector.broadcast %cst_42 : f32 to vector<16x1xf32>
    %125 = arith.addf %121, %124 : vector<16x1xf32>
    %126 = math.rsqrt %125 : vector<16x1xf32>
    %127 = vector.broadcast %126 : vector<16x1xf32> to vector<16x32xf32>
    %128 = arith.mulf %123, %127 : vector<16x32xf32>
    %129 = vector.broadcast %10 : vector<1x32xf32> to vector<16x32xf32>
    %130 = arith.mulf %128, %129 : vector<16x32xf32>
    %131 = vector.broadcast %11 : vector<1x32xf32> to vector<16x32xf32>
    %132 = arith.addf %130, %131 : vector<16x32xf32>
    %c0_43 = arith.constant 0 : index
    %c0_44 = arith.constant 0 : index
    %c0_45 = arith.constant 0 : index
    %133 = vector.load %arg6[%c0_43, %c0_44, %c0_45] : memref<1x32x2048xf32, #tpu.memory_space<vmem>>, vector<1x32x2048xf32>
    %134 = vector.shape_cast %133 : vector<1x32x2048xf32> to vector<32x2048xf32>
    %cst_46 = arith.constant dense<0.000000e+00> : vector<16x2048xf32>
    %135 = tpu.matmul %132, %134, %cst_46 {dimension_numbers = #tpu.dot_dimension_numbers<[1], [0], [0], [1], [0, 0, 1, 1], [], []>} : vector<16x32xf32>, vector<32x2048xf32>, vector<16x2048xf32> -> vector<16x2048xf32>
    %c0_47 = arith.constant 0 : index
    %c0_48 = arith.constant 0 : index
    %c0_49 = arith.constant 0 : index
    %136 = vector.load %arg7[%c0_47, %c0_48, %c0_49] : memref<1x1x2048xf32, #tpu.memory_space<vmem>>, vector<1x1x2048xf32>
    %137 = vector.shape_cast %136 : vector<1x1x2048xf32> to vector<1x2048xf32>
    %138 = vector.broadcast %137 : vector<1x2048xf32> to vector<16x2048xf32>
    %139 = arith.addf %135, %138 : vector<16x2048xf32>
    %cst_50 = arith.constant 0.000000e+00 : f32
    %140 = vector.broadcast %cst_50 : f32 to vector<16x2048xf32>
    %141 = arith.maximumf %139, %140 : vector<16x2048xf32>
    %c0_51 = arith.constant 0 : index
    %c0_52 = arith.constant 0 : index
    %c0_53 = arith.constant 0 : index
    %142 = vector.load %arg8[%c0_51, %c0_52, %c0_53] : memref<1x32x2048xf32, #tpu.memory_space<vmem>>, vector<1x32x2048xf32>
    %143 = vector.shape_cast %142 : vector<1x32x2048xf32> to vector<32x2048xf32>
    %cst_54 = arith.constant dense<0.000000e+00> : vector<16x32xf32>
    %144 = tpu.matmul %141, %143, %cst_54 {dimension_numbers = #tpu.dot_dimension_numbers<[1], [1], [0], [0], [0, 0, 1, 0], [], []>} : vector<16x2048xf32>, vector<32x2048xf32>, vector<16x32xf32> -> vector<16x32xf32>
    %145 = vector.broadcast %14 : vector<1x32xf32> to vector<16x32xf32>
    %146 = arith.addf %144, %145 : vector<16x32xf32>
    %147 = arith.addf %132, %146 : vector<16x32xf32>
    %cst_55 = arith.constant dense<0.000000e+00> : vector<16xf32>
    %148 = vector.multi_reduction <add>, %147, %cst_55 [1] : vector<16x32xf32> to vector<16xf32>
    %149 = vector.shape_cast %148 : vector<16xf32> to vector<16x1xf32>
    %cst_56 = arith.constant 3.200000e+01 : f32
    %150 = vector.broadcast %cst_56 : f32 to vector<16x1xf32>
    %151 = arith.divf %149, %150 : vector<16x1xf32>
    %152 = vector.broadcast %151 : vector<16x1xf32> to vector<16x32xf32>
    %153 = arith.subf %147, %152 : vector<16x32xf32>
    %154 = arith.mulf %153, %153 : vector<16x32xf32>
    %cst_57 = arith.constant dense<0.000000e+00> : vector<16xf32>
    %155 = vector.multi_reduction <add>, %154, %cst_57 [1] : vector<16x32xf32> to vector<16xf32>
    %156 = vector.shape_cast %155 : vector<16xf32> to vector<16x1xf32>
    %cst_58 = arith.constant 3.200000e+01 : f32
    %157 = vector.broadcast %cst_58 : f32 to vector<16x1xf32>
    %158 = arith.divf %156, %157 : vector<16x1xf32>
    %159 = vector.broadcast %151 : vector<16x1xf32> to vector<16x32xf32>
    %160 = arith.subf %147, %159 : vector<16x32xf32>
    %cst_59 = arith.constant 9.99999974E-6 : f32
    %161 = vector.broadcast %cst_59 : f32 to vector<16x1xf32>
    %162 = arith.addf %158, %161 : vector<16x1xf32>
    %163 = math.rsqrt %162 : vector<16x1xf32>
    %164 = vector.broadcast %163 : vector<16x1xf32> to vector<16x32xf32>
    %165 = arith.mulf %160, %164 : vector<16x32xf32>
    %166 = vector.broadcast %12 : vector<1x32xf32> to vector<16x32xf32>
    %167 = arith.mulf %165, %166 : vector<16x32xf32>
    %168 = vector.broadcast %13 : vector<1x32xf32> to vector<16x32xf32>
    %169 = arith.addf %167, %168 : vector<16x32xf32>
    %c0_60 = arith.constant 0 : index
    %c0_61 = arith.constant 0 : index
    %170 = vector.load %arg12[%c0_60, %c0_61] : memref<16x32xf32, #tpu.memory_space<vmem>>, vector<16x32xf32>
    tpu.vector_store %arg12[%c0_60, %c0_61], %169 {strides = array<i32>} : memref<16x32xf32, #tpu.memory_space<vmem>>, vector<16x32xf32>,
    %c1_i32 = arith.constant 1 : i32
    %171 = arith.cmpi eq, %arg0, %c1_i32 : i32
    %172 = arith.extui %171 : i1 to i32
    %c0_i32_62 = arith.constant 0 : i32
    %173 = arith.cmpi ne, %172, %c0_i32_62 : i32
    scf.if %173 {
      %c7 = arith.constant 7 : index
      %c0_63 = arith.constant 0 : index
      %174 = tpu.strided_load %arg12[%c7, %c0_63] {strides = array<i32: 8, 1>} : memref<16x32xf32, #tpu.memory_space<vmem>>, vector<2x32xf32>
      %c0_64 = arith.constant 0 : index
      %c0_65 = arith.constant 0 : index
      %175 = vector.load %arg9[%c0_64, %c0_65] : memref<32x4xf32, #tpu.memory_space<vmem>>, vector<32x4xf32>
      %cst_66 = arith.constant dense<0.000000e+00> : vector<2x4xf32>
      %176 = tpu.matmul %174, %175, %cst_66 {dimension_numbers = #tpu.dot_dimension_numbers<[1], [0], [0], [1], [0, 0, 1, 1], [], []>} : vector<2x32xf32>, vector<32x4xf32>, vector<2x4xf32> -> vector<2x4xf32>
      %c0_67 = arith.constant 0 : index
      %c0_68 = arith.constant 0 : index
      %177 = vector.load %arg10[%c0_67, %c0_68] : memref<1x4xf32, #tpu.memory_space<vmem>>, vector<1x4xf32>
      %178 = vector.broadcast %177 : vector<1x4xf32> to vector<2x4xf32>
      %179 = arith.addf %176, %178 : vector<2x4xf32>
      %c0_69 = arith.constant 0 : index
      %c0_70 = arith.constant 0 : index
      %180 = vector.load %arg11[%c0_69, %c0_70] : memref<2x4xf32, #tpu.memory_space<vmem>>, vector<2x4xf32>
      tpu.vector_store %arg11[%c0_69, %c0_70], %179 {strides = array<i32>} : memref<2x4xf32, #tpu.memory_space<vmem>>, vector<2x4xf32>,
    } else {
    }
    return
  }
  func.func @transform_0(%arg0: i32) -> (i32, i32, i32) {
    %c0_i32 = arith.constant 0 : i32
    %c0_i32_0 = arith.constant 0 : i32
    %c0_i32_1 = arith.constant 0 : i32
    %c0_i32_2 = arith.constant 0 : i32
    return %c0_i32, %c0_i32_0, %c0_i32_1 : i32, i32, i32
  }
  func.func @transform_1(%arg0: i32) -> (i32, i32) {
    %c0_i32 = arith.constant 0 : i32
    %c0_i32_0 = arith.constant 0 : i32
    %c0_i32_1 = arith.constant 0 : i32
    return %c0_i32, %c0_i32_0 : i32, i32
  }
  func.func @transform_2(%arg0: i32) -> (i32, i32) {
    %c0_i32 = arith.constant 0 : i32
    %c0_i32_0 = arith.constant 0 : i32
    %c0_i32_1 = arith.constant 0 : i32
    return %c0_i32, %c0_i32_0 : i32, i32
  }
  func.func @transform_3(%arg0: i32) -> (i32, i32, i32, i32) {
    %c0_i32 = arith.constant 0 : i32
    %c0_i32_0 = arith.constant 0 : i32
    %c0_i32_1 = arith.constant 0 : i32
    %c0_i32_2 = arith.constant 0 : i32
    return %arg0, %c0_i32, %c0_i32_0, %c0_i32_1 : i32, i32, i32, i32
  }
  func.func @transform_4(%arg0: i32) -> (i32, i32, i32) {
    %c0_i32 = arith.constant 0 : i32
    %c0_i32_0 = arith.constant 0 : i32
    %c0_i32_1 = arith.constant 0 : i32
    return %arg0, %c0_i32, %c0_i32_0 : i32, i32, i32
  }
  func.func @transform_5(%arg0: i32) -> (i32, i32, i32) {
    %c0_i32 = arith.constant 0 : i32
    %c0_i32_0 = arith.constant 0 : i32
    %c0_i32_1 = arith.constant 0 : i32
    return %arg0, %c0_i32, %c0_i32_0 : i32, i32, i32
  }
  func.func @transform_6(%arg0: i32) -> (i32, i32, i32) {
    %c0_i32 = arith.constant 0 : i32
    %c0_i32_0 = arith.constant 0 : i32
    %c0_i32_1 = arith.constant 0 : i32
    return %arg0, %c0_i32, %c0_i32_0 : i32, i32, i32
  }
  func.func @transform_7(%arg0: i32) -> (i32, i32, i32) {
    %c0_i32 = arith.constant 0 : i32
    %c0_i32_0 = arith.constant 0 : i32
    %c0_i32_1 = arith.constant 0 : i32
    return %arg0, %c0_i32, %c0_i32_0 : i32, i32, i32
  }
  func.func @transform_8(%arg0: i32) -> (i32, i32) {
    %c0_i32 = arith.constant 0 : i32
    %c0_i32_0 = arith.constant 0 : i32
    %c0_i32_1 = arith.constant 0 : i32
    return %c0_i32, %c0_i32_0 : i32, i32
  }
  func.func @transform_9(%arg0: i32) -> (i32, i32) {
    %c0_i32 = arith.constant 0 : i32
    %c0_i32_0 = arith.constant 0 : i32
    %c0_i32_1 = arith.constant 0 : i32
    return %c0_i32, %c0_i32_0 : i32, i32
  }
  func.func @transform_10(%arg0: i32) -> (i32, i32) {
    %c0_i32 = arith.constant 0 : i32
    %c0_i32_0 = arith.constant 0 : i32
    %c0_i32_1 = arith.constant 0 : i32
    return %c0_i32, %c0_i32_0 : i32, i32
  }
}

</mosaic_0001>

<bundles_post_ra>
// kernel: tpu_custom_call.1
= control target key start
LH: loop header
LB: loop body
LE: loop exit
PB: predicated region body
PF: predicated region fallthrough
CT: control target
= control target key end

     0   :  { %s5433_s0 = inlined_call_operand.vmem [shape: f32[2,8,16], index: 0, kind: input, shape index: {}]   ;;  %s5434_s1 = inlined_call_operand.vmem [shape: f32[16,32], index: 1, kind: input, shape index: {}]   ;;  %s5435_s2 = inlined_call_operand.vmem [shape: f32[1,32], index: 2, kind: input, shape index: {}]   ;;  %s5436_s3 = inlined_call_operand.hbm [shape: f32[2,4,32,32], index: 3, kind: input, shape index: {}]   ;;  %s5437_s4 = inlined_call_operand.vmem [shape: f32[2,9,32], index: 4, kind: input, shape index: {}]   ;;  %s5438_s5 = inlined_call_operand.hbm [shape: f32[2,32,2048], index: 5, kind: input, shape index: {}]   ;;  %s5439_s6 = inlined_call_operand.vmem [shape: f32[2,1,2048], index: 6, kind: input, shape index: {}]   ;;  %s5440_s7 = inlined_call_operand.hbm [shape: f32[2,32,2048], index: 7, kind: input, shape index: {}]   ;;  %s5441_s8 = inlined_call_operand.vmem [shape: f32[32,4], index: 8, kind: input, shape index: {}]   ;;  %s5442_s9 = inlined_call_operand.vmem [shape: f32[1,4], index: 9, kind: input, shape index: {}]   ;;  %s5443_s10 = inlined_call_operand.hbm [shape: f32[2,4], index: 10, kind: output, shape index: {}]  }
   0x1   :  { %5453 = sst [smem:[#allocation16_spill]] %s5438_s5 }
   0x2   :  { %5454 = sst [smem:[#allocation17_spill]] %s5443_s10 }
   0x3   :  { %15 = vsyncpa [#allocation4], 0 }
   0x4   :  { %17 = vsyncpa [#allocation4 + $0x1], 0 }
   0x5   :  { %18 = vsyncpa [#allocation7], 0 }
   0x6   :  { %20 = vsyncpa [#allocation7 + $0x1], 0 }
   0x7   :  { %21 = vsyncpa [#allocation5], 0  ;;  %s4688_s13 = smov 0   ;;  %s4690_s14 = smov 0  }
   0x8   :  { %s4692_s15 = smov 0   ;;  %s4694_s16 = smov 0  }
   0x9 LB: > { %5455 = sst [smem:[#allocation13_spill]] %s4609_s15  ;;  %s4707_s17 = sadd.s32 4294967295, %s4613_s16   ;;  %s4613_s16 = sphi %s4694_s16, %s5470_s16   ;;  %s4609_s15 = sphi %s4692_s15, %s5472_s15   ;;  %s4605_s14 = sphi %s4690_s14, %s5474_s14   ;;  %s4601_s13 = sphi %s4688_s13, %s5473_s13  }
   0xa   : > { %s4710_s18 = sadd.s32 1, %s4613_s16   ;;  %s97_s20 = sadd.s32 1, %s4609_s15 }
   0xb   : > { %5456 = sst [smem:[#allocation14_spill]] %s4710_s18  ;;  %s94_s19 = ssub.s32 %s4613_s16, %s4710_s18 }
   0xc   : > { %p95_p0 = scmp.eq.s32.totalorder %s94_s19, 0  ;;  %p104_p1 = scmp.ne.s32.totalorder %s4609_s15, %s4605_s14 }
   0xd   : > { %p105_p2 = scmp.eq.s32.totalorder %s4613_s16, 0  ;;  %p110_p3 = scmp.ne.s32.totalorder %s4605_s14, %s4601_s13 }
   0xe   : > { %s4720_s21 = scalar_select %p95_p0, %s4609_s15, %s97_s20  }
   0xf   : > { %p106_p4 = por %p105_p2, %p104_p1  ;;  %p111_p5 = scmp.eq.s32.totalorder %s4707_s17, 0 }
  0x10   : > { %5457 = sst [smem:[#allocation15_spill]] %s4720_s21  ;;  %p4372_p6 = scmp.lt.s32.totalorder %s4613_s16, 2 }
  0x11   : > { %p4724_p7 = por %p111_p5, %p110_p3  ;;  %s4729_s23 = sand.u32 1, %s4609_s15  }
  0x12   : > { %p4731_p8 = pnand %p4372_p6, %p106_p4  ;;  %s345_s25 = sand.u32 1, %s4613_s16  }
  0x13   : > { %s5458_s22 = scalar_select %p4724_p7, 1, 0 }
  0x14   : > { %s5444_s26 = sshll.u32 %s4729_s23, 9  ;;  %s5445_s27 = sshll.u32 %s4613_s16, 13 }
  0x15   : > { %s5460_s5 = sld [smem:[#allocation16_spill]]  ;;  %s349_s11 = scalar_lea.vmem [#allocation6], %s5444_s26 }
  0x16   : > { %s356_s12 = sshll.u32 %s349_s11, 4  ;;  %s4749_s13 = scalar_lea.sflag [#allocation7], %s345_s25  ;;  %s4747_s12 = int_to_ptr.vmem [resolvable:$true] %s356_s12 }
  0x17   : > { %p4755_p10 = pneg %p4731_p8 }
  0x1b   : > { %s4743_s30 = scalar_lea.hbm %s5460_s5, %s5445_s27  ;;  %s4468_s26 = scalar_lea.hbm %s5460_s5, 16384 }
  0x1c   : > { %s4463_s19 = scalar_lea.hbm %s4743_s30, 8192  ;;  %p4469_p13 = scmp.lt.s32.totalorder %s4743_s30, %s5460_s5 }
  0x1d   : > { %p4464_p9 = scmp.ne.s32.totalorder %s4743_s30, %s4463_s19  ;;  %p4470_p0 = scmp.lt.s32.totalorder %s4468_s26, %s4463_s19 }
  0x1f   : > { %p4466_p11 = pnand %p4755_p10, %p4464_p9  ;;  %p4471_p1 = por %p4470_p0, %p4469_p13 }
  0x21   : > { %p4467_p12 = pneg %p4466_p11 }
  0x23   : > { %p4472_p2 = pnand %p4471_p1, %p4467_p12 }
  0x25   : > { %4475 = shalt.err (!%p4472_p2)
}
  0x26   : > { %s4476_s25 = scalar_lea.vmem %s4747_s12, 8192  ;;  %s4615_s21 = smov [#allocation6]  }
  0x27   : > { %p4477_p3 = scmp.ne.s32.totalorder %s4747_s12, %s4476_s25  ;;  %s4481_s28 = sshll.u32 %s4615_s21, 4  ;;  %s4482_s28 = int_to_ptr.vmem [resolvable:$false] %s4481_s28 }
  0x28   : > { %s4483_s29 = scalar_lea.vmem %s4482_s28, 16384  ;;  %p4484_p6 = scmp.lt.s32.totalorder %s4747_s12, %s4482_s28 }
  0x29   : > { %p4479_p4 = pnand %p4477_p3, %p4755_p10  ;;  %p4485_p9 = scmp.lt.s32.totalorder %s4483_s29, %s4476_s25 }
  0x2b   : > { %p4480_p5 = pneg %p4479_p4  ;;  %p4486_p11 = por %p4485_p9, %p4484_p6 }
  0x2d   : > { %p4487_p7 = pnand %p4486_p11, %p4480_p5 }
  0x2f   : > { %4490 = shalt.err (!%p4487_p7)
}
  0x30   : > { %s5450_s26 = smov 2048   ;;  %s5451_s21 = smov 128  }
  0x31   : > { %4368 = dma.hbm_to_vmem [thread:$0]  (!%p4731_p8), %s4743_s30, 8192, %s4747_s12, %s4749_s13, %s5450_s26, %s5450_s26, %s5451_s21  }
  0x32   : > { %s5462_s27 = sshll.u32 %s4613_s16, 13  ;;  %s5463_s28 = sshll.u32 %s4729_s23, 9 }
  0x33   : > { %s4786_s25 = scalar_lea.hbm %s5440_s7, %s5462_s27  ;;  %s377_s29 = scalar_lea.vmem [#allocation8], %s5463_s28 }
  0x34   : > { %s384_s5 = sshll.u32 %s377_s29, 4  ;;  %p4062_p7 = scmp.ge.s32.totalorder %s4613_s16, 1  ;;  %s4791_s5 = int_to_ptr.vmem [resolvable:$true] %s384_s5 }
  0x35   : > { %p392_p12 = scmp.lt.s32.totalorder %s4613_s16, 3  ;;  %s4053_s15 = sshll.u32 %s4729_s23, 7 }
  0x36   : > { %s4141_s30 = sshll.u32 %s4613_s16, 11  ;;  %s320_s12 = scalar_lea.vmem [#allocation3], %s4053_s15 }
  0x37   : > { %p4795_p13 = pnand %p4062_p7, %p392_p12  ;;  %s327_s26 = sshll.u32 %s320_s12, 4  ;;  %s4805_s26 = int_to_ptr.vmem [resolvable:$true] %s327_s26 }
  0x38   : > { %s4803_s27 = scalar_lea.hbm %s5436_s3, %s4141_s30  ;;  %s317_s11 = scalar_lea.sflag [#allocation4], %s4729_s23 }
  0x39   : > { %s5464_s18 = scalar_select %p4795_p13, 1, 0 }
  0x3a   : > { %s4491_s28 = scalar_lea.hbm %s4803_s27, 2048  ;;  %s4496_s15 = scalar_lea.hbm %s5436_s3, 4096 }
  0x3b   : > { %p4492_p0 = scmp.ne.s32.totalorder %s4803_s27, %s4491_s28  ;;  %p4497_p3 = scmp.lt.s32.totalorder %s4803_s27, %s5436_s3 }
  0x3c   : > { %p4498_p4 = scmp.lt.s32.totalorder %s4496_s15, %s4491_s28 }
  0x3d   : > { %p4494_p1 = pnand %p4492_p0, %p4755_p10 }
  0x3e   : > { %p4499_p5 = por %p4498_p4, %p4497_p3 }
  0x3f   : > { %p4495_p2 = pneg %p4494_p1 }
  0x41   : > { %p4500_p6 = pnand %p4499_p5, %p4495_p2 }
  0x43   : > { %4503 = shalt.err (!%p4500_p6)
}
  0x44   : > { %s4504_s21 = scalar_lea.vmem %s4805_s26, 2048  ;;  %s4618_s30 = smov [#allocation3]  }
  0x45   : > { %p4505_p9 = scmp.ne.s32.totalorder %s4805_s26, %s4504_s21  ;;  %s4509_s19 = sshll.u32 %s4618_s30, 4  ;;  %s4510_s19 = int_to_ptr.vmem [resolvable:$false] %s4509_s19 }
  0x46   : > { %s4511_s29 = scalar_lea.vmem %s4510_s19, 4096  ;;  %p4512_p12 = scmp.lt.s32.totalorder %s4805_s26, %s4510_s19 }
  0x47   : > { %p4507_p11 = pnand %p4505_p9, %p4755_p10  ;;  %p4513_p0 = scmp.lt.s32.totalorder %s4511_s29, %s4504_s21 }
  0x49   : > { %p4508_p7 = pneg %p4507_p11  ;;  %p4514_p1 = por %p4513_p0, %p4512_p12 }
  0x4b   : > { %p4515_p13 = pnand %p4514_p1, %p4508_p7 }
  0x4d   : > { %4518 = shalt.err (!%p4515_p13)
}
  0x4e   : > { %s4619_s10 = smov 8   ;;  %s5465_s28 = smov 128  }
  0x4f   : > { %4365 = dma.hbm_to_vmem [thread:$0]  (!%p4731_p8), %s4803_s27, 2048, %s4805_s26, %s317_s11, %s5465_s28, %s5465_s28, %s4619_s10  }
  0x50   : > { %s4519_s16 = scalar_lea.hbm %s4786_s25, 8192  ;;  %s4524_s21 = scalar_lea.hbm %s5440_s7, 16384 }
  0x51   : > { %p4520_p2 = scmp.ne.s32.totalorder %s4786_s25, %s4519_s16  ;;  %p4525_p13 = scmp.lt.s32.totalorder %s4786_s25, %s5440_s7 }
  0x52   : > { %p4526_p5 = scmp.lt.s32.totalorder %s4524_s21, %s4519_s16 }
  0x53   : > { %p4522_p3 = pnand %p4520_p2, %p4755_p10 }
  0x54   : > { %p4527_p6 = por %p4526_p5, %p4525_p13 }
  0x55   : > { %p4523_p4 = pneg %p4522_p3 }
  0x57   : > { %p4528_p9 = pnand %p4527_p6, %p4523_p4 }
  0x59   : > { %4531 = shalt.err (!%p4528_p9)
}
  0x5a   : > { %s4532_s23 = scalar_lea.vmem %s4791_s5, 8192  ;;  %s4620_s26 = smov [#allocation8]  }
  0x5b   : > { %p4533_p11 = scmp.ne.s32.totalorder %s4791_s5, %s4532_s23  ;;  %s4537_s27 = sshll.u32 %s4620_s26, 4  ;;  %s4538_s27 = int_to_ptr.vmem [resolvable:$false] %s4537_s27 }
  0x5c   : > { %s4539_s11 = scalar_lea.vmem %s4538_s27, 16384  ;;  %p4540_p0 = scmp.lt.s32.totalorder %s4791_s5, %s4538_s27 }
  0x5d   : > { %p4535_p7 = pnand %p4533_p11, %p4755_p10  ;;  %p4541_p1 = scmp.lt.s32.totalorder %s4539_s11, %s4532_s23 }
  0x5f   : > { %p4536_p12 = pneg %p4535_p7  ;;  %p4542_p2 = por %p4541_p1, %p4540_p0 }
  0x61   : > { %p4543_p3 = pnand %p4542_p2, %p4536_p12 }
  0x63   : > { %4546 = shalt.err (!%p4543_p3)
}
  0x64   : > { %s5466_s29 = smov 2048   ;;  %p5467_p10 = scmp.ne.s32.totalorder %s5464_s18, 0 }
  0x65   : > { %4371 = dma.hbm_to_vmem [thread:$0]  (!%p4731_p8), %s4786_s25, 8192, %s4791_s5, %s4749_s13, %s5466_s29, %s5466_s29, %s5465_s28  }
  0x66   : > { %396 = sbr.rel (%p5467_p10) target bundleno = 4412 (0x113c), region = 60  ;;  %s398_s20 = sand.u32 (!%p5467_p10), 1, %s4605_s14  }
  0x67   : > { %s4063_s10 = sshll.u32 (!%p5467_p10), %s398_s20, 7  ;;  %s399_s16 = scalar_lea.sflag (!%p5467_p10), [#allocation4], %s398_s20 }
  0x68   : > { %s4859_s15 = scalar_lea.vmem (!%p5467_p10), [#allocation3], %s4063_s10  ;;  %p5468_p4 = scmp.ne.s32.totalorder (!%p5467_p10), %s5458_s22, 0 }
  0x6b   : > { %4588 = dma.done.wait (%p5468_p4), %s399_s16, 2048  }
  0x6c   : > { %4590 = vsyncadd (%p5468_p4), %s399_s16, 4294965248  ;;  %s407_s24 = sand.u32 1, %s4707_s17   ;;  %s4064_s12 = sshll.u32 %s398_s20, 9 }
  0x6d   : > { %s408_s5 = scalar_lea.sflag [#allocation7], %s407_s24  ;;  %s4866_s13 = scalar_lea.vmem [#allocation6], %s4064_s12 }
  0x6e   : > { %4592 = dma.done.wait (%p5468_p4), %s408_s5, 16384  }
  0x6f   : > { %4594 = vsyncadd (%p5468_p4), %s408_s5, 4294950912  ;;  %p471_p8 = scmp.lt.s32.totalorder %s4707_s17, 1  ;;  %s4884_s27 = scalar_lea.vmem [#allocation8], %s4064_s12 }
  0x70   : > { %p4069_p13 = scmp.ne.s32.totalorder %s4707_s17, 0 }
  0x71   : > { %s472_s18 = scalar_select %p471_p8, %s4707_s17, 1 }
  0x72   : > { %483 = sbr.rel (%p4069_p13) target bundleno = 322 (0x142), region = 76 }
  0x73   : > { %s4144_s25 = sshll.u32 %s472_s18, 4 }
  0x74   : > { %s4877_s30 = scalar_lea.vmem %s5437_s4, %s4144_s25  ;;  %s4882_s26 = scalar_lea.vmem %s5439_s6, %s4144_s25 }
  0x77   : > { %v487_v0 = vld [vmem:[%s5434_s1 + $0x8] sm:$0xff]  ;;  %v486_v1 = vld [vmem:[%s5434_s1] sm:$0xff]  ;;  %vm495_vm0 = vcmask 130048   ;;  %vm580_vm1 = vcmask 25600   ;;  %v4621_v4 = vmov 0.0   ;;  %vm577_vm2 = vcmask 261120  }
  0x78   : > { %v484_v2 = vld [vmem:[%s5433_s0] sm:$0xff]  ;;  %4210 = vmatprep.subr.mxu0 %v487_v0  ;;  %v485_v3 = vld [vmem:[%s5433_s0 + $0x8] sm:$0xff]  ;;  %581 = vst.msk [vmem:[#allocation9] sm:$0x3] %vm580_vm1, %v4621_v4 }
  0x79   : > { %4214 = vmatprep.mubr.msk.f32.mxu0 %vm495_vm0, %v484_v2  ;;  %4211 = vmatpush3.msra.mxu0 %v487_v0  ;;  %v4070_v5 = vld [vmem:[%s5435_s2] ss:$0 sm:$0xff] }
  0x7a   : > { %4212 = vmatprep.subr.mxu0 %v486_v1 }
  0x7b   : > { %4213 = vmatpush3.msra.mxu0 %v486_v1 }
  0x7c   : > { %4215 = vmatmul.mubr.msk.f32.vlgmr.msra.gmra.mxu0 %vm495_vm0, %v485_v3 }
 0x13c   : > { %v4216_v6 = vpop.f32.mrf.mxu0 }
 0x13d   : > { %v574_v7 = vadd.f32 %v4216_v6, %v4070_v5 }
 0x13e   : > { %v568_v8 = vpop.f32.mrf.mxu0 }
 0x13f   : > { %579 = vst.msk [vmem:[#allocation2 + $0x8] sm:$0xff] %vm577_vm2, %v574_v7  ;;  %v569_v9 = vadd.f32 %v4070_v5, %v568_v8 }
 0x141   : > { %578 = vst.msk [vmem:[#allocation2] sm:$0xff] %vm577_vm2, %v569_v9 }
 0x142 PF: > { %v589_v10 = vld [vmem:[%s4859_s15 + $0x18] sm:$0xff]  ;;  %v588_v12 = vld [vmem:[%s4859_s15 + $0x10] sm:$0xff]  ;;  %v587_v14 = vld [vmem:[%s4859_s15 + $0x8] sm:$0xff]  ;;  %vm609_vm3 = vcmask 261120   ;;  %v4622_v20 = vmov 0.0   ;;  %vm4623_vm4 = vmmov 0   ;;  %v605_v21 = vlaneseq }
 0x143   : > { %v4076_v11 = vld [vmem:[%s4859_s15 + $0x38] sm:$0xff]  ;;  %4217 = vmatprep.subr.mxu0 %v589_v10  ;;  %v4075_v13 = vld [vmem:[%s4859_s15 + $0x30] sm:$0xff]  ;;  %v4074_v15 = vld [vmem:[%s4859_s15 + $0x28] sm:$0xff]  ;;  %vm851_vm5 = vcmask 64512   ;;  %s4624_s25 = smov 120   ;;  %s4625_s28 = smov 112  }
 0x144   : > { %4228 = vmatprep.subr.mxu1 %v4076_v11  ;;  %4218 = vmatpush3.msra.mxu0 %v589_v10  ;;  %v586_v16 = vld [vmem:[%s4859_s15] sm:$0xff]  ;;  %v4927_v22 = vshrl.u32 %v605_v21, 7  ;;  %v4933_v24 = vld [vmem:[%s4877_s30] sm:$0xff]  ;;  %v4080_v38 = vld [vmem:[%s4859_s15 + $0x58] sm:$0xff]  ;;  %s4626_s21 = smov 104   ;;  %s4627_s19 = smov 8  }
 0x145   : > { %4229 = vmatpush3.msra.mxu1 %v4076_v11  ;;  %4219 = vmatprep.subr.mxu0 %v588_v12  ;;  %v4073_v17 = vld [vmem:[%s4859_s15 + $0x20] sm:$0xff]  ;;  %v4079_v39 = vld [vmem:[%s4859_s15 + $0x50] sm:$0xff]  ;;  %v4078_v40 = vld [vmem:[%s4859_s15 + $0x48] sm:$0xff]  ;;  %s4628_s23 = smov 16   ;;  %s4629_s22 = smov 24   ;;  %vm2193_vm6 = vcmask 195584  }
 0x146   : > { %4230 = vmatprep.subr.mxu1 %v4075_v13  ;;  %4220 = vmatpush3.msra.mxu0 %v588_v12  ;;  %v4912_v19 = vld [vmem:[#allocation2 + $0x8] sm:$0xff]  ;;  %v4930_v23 = vsub.s32 1, %v4927_v22  ;;  %v4936_v25 = vsub.s32 0, %v4927_v22  ;;  %v4077_v41 = vld [vmem:[%s4859_s15 + $0x40] sm:$0xff]  ;;  %v4989_v61 = vsub.s32 2, %v4927_v22  ;;  %vm2190_vm7 = vcmask 130048  }
 0x147   : > { %4231 = vmatpush3.msra.mxu1 %v4075_v13  ;;  %4221 = vmatprep.subr.mxu0 %v587_v14  ;;  %p4134_p5 = scmp.ne.s32.totalorder %s4707_s17, 1 }
 0x148   : > { %4232 = vmatprep.subr.mxu1 %v4074_v15  ;;  %v4910_v18 = vld [vmem:[#allocation2] sm:$0xff]  ;;  %4222 = vmatpush3.msra.mxu0 %v587_v14  ;;  %v696_v26 = vrot.slane %v4933_v24, %v4930_v23  ;;  %v608_v27 = vrot.slane %v4933_v24, %v4936_v25  ;;  %v775_v63 = vrot.slane %v4933_v24, %v4989_v61 }
 0x149   : > { %4233 = vmatpush3.msra.mxu1 %v4074_v15  ;;  %4223 = vmatprep.subr.mxu0 %v586_v16 }
 0x14a   : > { %4234 = vmatprep.subr.mxu1 %v4073_v17  ;;  %4224 = vmatpush3.msra.mxu0 %v586_v16 }
 0x14b   : > { %4225 = vmatprep.mubr.msk.f32.mxu0 %vm609_vm3, %v4910_v18  ;;  %4235 = vmatpush3.msra.mxu1 %v4073_v17 }
 0x14c   : > { %4236 = vmatprep.mubr.msk.f32.mxu1 %vm609_vm3, %v4910_v18  ;;  %4226 = vmatmul.mubr.msk.f32.vlgmr.msra.gmra.mxu0 %vm609_vm3, %v4912_v19 }
 0x14d   : > { %4237 = vmatmul.mubr.msk.f32.vlgmr.msra.gmra.mxu1 %vm609_vm3, %v4912_v19  ;;  %4247 = vmatprep.mubr.msk.f32.mxu0 %vm609_vm3, %v4910_v18 }
 0x14e   : > { %4250 = vmatprep.subr.mxu1 %v4622_v20  ;;  %4252 = vmatprep.mubr.msk.f32.mxu1 %vm4623_vm4, %v4622_v20 }
 0x14f   : > { %4239 = vmatprep.subr.mxu0 %v4080_v38 }
 0x150   : > { %4240 = vmatpush3.msra.mxu0 %v4080_v38 }
 0x151   : > { %4241 = vmatprep.subr.mxu0 %v4079_v39 }
 0x152   : > { %4242 = vmatpush3.msra.mxu0 %v4079_v39 }
 0x153   : > { %4243 = vmatprep.subr.mxu0 %v4078_v40 }
 0x154   : > { %4244 = vmatpush3.msra.mxu0 %v4078_v40 }
 0x155   : > { %4245 = vmatprep.subr.mxu0 %v4077_v41 }
 0x156   : > { %4246 = vmatpush3.msra.mxu0 %v4077_v41 }
 0x157   : > { %4248 = vmatmul.mubr.msk.f32.vlgmr.msra.gmra.mxu0 %vm609_vm3, %v4912_v19  ;;  %4270 = vmatprep.subr.mxu0 %v4622_v20 }
 0x158   : > { %4272 = vmatprep.mubr.msk.f32.mxu0 %vm4623_vm4, %v4622_v20 }
 0x20c   : > { %v4227_v28 = vpop.f32.mrf.mxu0 }
 0x20d   : > { %v4238_v29 = vpop.f32.mrf.mxu1  ;;  %v688_v36 = vadd.f32 %v4227_v28, %v608_v27 }
 0x20e   : > { %v4942_v30 = vadd.f32 %v4238_v29, %v696_v26  ;;  %v682_v31 = vpop.f32.mrf.mxu0 }
 0x20f   : > { %v763_v32 = vpop.f32.mrf.mxu1  ;;  %v683_v33 = vadd.f32 %v682_v31, %v608_v27  ;;  %v4961_v37 = vmul.f32 0.35355338, %v688_v36 }
 0x210   : > { %v4944_v34 = vadd.f32 %v763_v32, %v696_v26  ;;  %1252 = vrot.lane.b32.xlu1 %v4942_v30, %s4624_s25 }
 0x211   : > { %v4948_v35 = vmul.f32 0.35355338, %v683_v33 }
 0x212   : > { %4251 = vmatpush3.xpose.msk.msra.mxu1 %vm851_vm5, %v4944_v34 }
 0x213   : > { %4255 = vmatprep.subr.mxu1 %v4622_v20 }
 0x214   : > { %1172 = vrot.lane.b32.xlu1 %v4948_v35, %s4624_s25 }
 0x215   : > { %4253 = vmatmul.mubr.msk.f32.vlgmr.msra.gmra.mxu1 %vm851_vm5, %v4948_v35 }
 0x216   : > { %4256 = vmatpush3.xpose.msk.msra.mxu1 %vm851_vm5, %v4942_v30  ;;  %4257 = vmatprep.mubr.msk.f32.mxu1 %vm4623_vm4, %v4622_v20 }
 0x217   : > { %4260 = vmatprep.subr.mxu1 %v4622_v20  ;;  %v4249_v62 = vpop.f32.mrf.mxu0 }
 0x218   : > { %v4993_v1 = vadd.f32 %v4249_v62, %v775_v63 }
 0x219   : > { %4258 = vmatmul.mubr.msk.f32.vlgmr.msra.gmra.mxu1 %vm851_vm5, %v4961_v37  ;;  %v842_v0 = vpop.f32.mrf.mxu0 }
 0x21a   : > { %4262 = vmatprep.mubr.msk.f32.mxu1 %vm4623_vm4, %v4622_v20  ;;  %v4995_v2 = vadd.f32 %v842_v0, %v775_v63 }
 0x21c   : > { %4261 = vmatpush3.msra.mxu1 %v4995_v2 }
 0x21d   : > { %4265 = vmatprep.subr.mxu1 %v4622_v20 }
 0x282   : > { %v1253_v52 = vpop.permute.xlu1 %1252 }
 0x286   : > { %v1173_v56 = vpop.permute.xlu1 %1172 }
 0x2d5   : > { %v924_v42 = vpop.f32.mrf.mxu1 }
 0x2d6   : > { %v1004_v43 = vsel %vm851_vm5, %v924_v42, -inf }
 0x2d7   : > { %1005 = vmax.xlane.f32.xlu0 %v1004_v43  ;;  %v4254_v44 = vpop.f32.mrf.mxu1 }
 0x2d9   : > { %v1000_v45 = vpop.f32.mrf.mxu1 }
 0x2da   : > { %v1007_v46 = vsel %vm851_vm5, %v1000_v45, -inf }
 0x2db   : > { %1008 = vmax.xlane.f32.xlu0 %v1007_v46  ;;  %v4259_v47 = vpop.f32.mrf.mxu1 }
 0x2f1   : > { %1174 = vrot.lane.b32.xlu0 %v4944_v34, %s4624_s25 }
 0x360   : > { %v1006_v48 = vpop.xlane.xlu0 %1005 }
 0x361   : > { %v1010_v49 = vsub.f32 %v924_v42, %v1006_v48 }
 0x363   : > { %v1012_v50 = vmul.f32 1.442695, %v1010_v49 }
 0x364   : > { %v1009_v51 = vpop.xlane.xlu0 %1008 }
 0x365   : > { %4422 = vpow2.f32 %v1012_v50  ;;  %v1011_v53 = vsub.f32 %v1000_v45, %v1009_v51 }
 0x367   : > { %v1014_v54 = vmul.f32 1.442695, %v1011_v53 }
 0x368   : > { %v1175_v55 = vpop.permute.xlu0 %1174 }
 0x369   : > { %4424 = vpow2.f32 %v1014_v54  ;;  %4271 = vmatpush3.xpose.msk.msra.mxu0 %vm851_vm5, %v1175_v55 }
 0x36a   : > { %4280 = vmatprep.subr.mxu0 %v4622_v20 }
 0x36c   : > { %4273 = vmatmul.mubr.msk.f32.vlgmr.msra.gmra.mxu0 %vm851_vm5, %v1173_v56 }
 0x36d   : > { %4282 = vmatprep.mubr.msk.f32.mxu0 %vm4623_vm4, %v4622_v20 }
 0x372   : > { %v4423_v57 = vpop.eup %4422 }
 0x373   : > { %v1016_v58 = vsel %vm851_vm5, %v4423_v57, 0.0 }
 0x374   : > { %1017 = vadd.xlane.f32.xlu1 %v1016_v58 }
 0x376   : > { %v4425_v59 = vpop.eup %4424 }
 0x377   : > { %v1019_v60 = vsel %vm851_vm5, %v4425_v59, 0.0 }
 0x378   : > { %1020 = vadd.xlane.f32.xlu1 %v1019_v60 }
 0x389   : > { %1250 = vrot.lane.b32.xlu1 %v4961_v37, %s4624_s25 }
 0x3fd   : > { %v1018_v3 = vpop.xlane.xlu1 %1017 }
 0x3fe   : > { %4426 = vrcp.f32 %v1018_v3 }
 0x401   : > { %v1021_v4 = vpop.xlane.xlu1 %1020 }
 0x402   : > { %4428 = vrcp.f32 %v1021_v4 }
 0x405   : > { %v1251_v9 = vpop.permute.xlu1 %1250 }
 0x40b   : > { %v4427_v5 = vpop.eup %4426 }
 0x40c   : > { %v1023_v6 = vmul.f32 %v4427_v5, %v4423_v57 }
 0x40e   : > { %4263 = vmatmul.mubr.msk.f32.vlgmr.msra.gmra.mxu1 %vm851_vm5, %v1023_v6 }
 0x40f   : > { %v4429_v7 = vpop.eup %4428  ;;  %4266 = vmatpush3.msra.mxu1 %v4993_v1  ;;  %4267 = vmatprep.mubr.msk.f32.mxu1 %vm4623_vm4, %v4622_v20 }
 0x410   : > { %4275 = vmatprep.subr.mxu1 %v4622_v20  ;;  %v1025_v8 = vmul.f32 %v4429_v7, %v4425_v59 }
 0x412   : > { %4268 = vmatmul.mubr.msk.f32.vlgmr.msra.gmra.mxu1 %vm851_vm5, %v1025_v8 }
 0x413   : > { %4276 = vmatpush3.xpose.msk.msra.mxu1 %vm851_vm5, %v1253_v52  ;;  %4277 = vmatprep.mubr.msk.f32.mxu1 %vm4623_vm4, %v4622_v20 }
 0x414   : > { %4285 = vmatprep.subr.mxu1 %v4622_v20 }
 0x416   : > { %4278 = vmatmul.mubr.msk.f32.vlgmr.msra.gmra.mxu1 %vm851_vm5, %v1251_v9 }
 0x417   : > { %4287 = vmatprep.mubr.msk.f32.mxu1 %vm4623_vm4, %v4622_v20 }
 0x42c   : > { %v1246_v10 = vpop.f32.mrf.mxu0 }
 0x42d   : > { %v1328_v11 = vsel %vm851_vm5, %v1246_v10, -inf }
 0x42e   : > { %1329 = vmax.xlane.f32.xlu0 %v1328_v11  ;;  %v4274_v12 = vpop.f32.mrf.mxu0 }
 0x4b7   : > { %v1330_v13 = vpop.xlane.xlu0 %1329 }
 0x4b8   : > { %v1334_v14 = vsub.f32 %v1246_v10, %v1330_v13 }
 0x4ba   : > { %v1336_v15 = vmul.f32 1.442695, %v1334_v14 }
 0x4bc   : > { %4430 = vpow2.f32 %v1336_v15 }
 0x4c9   : > { %v4431_v16 = vpop.eup %4430 }
 0x4ca   : > { %v1340_v17 = vsel %vm851_vm5, %v4431_v16, 0.0 }
 0x4cb   : > { %1341 = vadd.xlane.f32.xlu0 %v1340_v17 }
 0x4ce   : > { %v5016_v21 = vpop.f32.mrf.mxu1 }
 0x4d0   : > { %v4264_v26 = vpop.f32.mrf.mxu1 }
 0x4d2   : > { %v5018_v27 = vpop.f32.mrf.mxu1 }
 0x4d4   : > { %v4269_v28 = vpop.f32.mrf.mxu1 }
 0x4d6   : > { %v1324_v29 = vpop.f32.mrf.mxu1 }
 0x4d7   : > { %v1331_v31 = vsel %vm851_vm5, %v1324_v29, -inf }
 0x4d8   : > { %1332 = vmax.xlane.f32.xlu1 %v1331_v31  ;;  %v4279_v32 = vpop.f32.mrf.mxu1 }
 0x4e1   : > { %1351 = vrot.lane.b32.xlu0 %v4995_v2, %s4624_s25 }
 0x4e9   : > { %1428 = vrot.lane.b32.xlu1 %v4993_v1, %s4624_s25 }
 0x4ed   : > { %1506 = vrot.lane.b32.xlu1 %v4944_v34, %s4625_s28 }
 0x4f1   : > { %1584 = vrot.lane.b32.xlu1 %v4942_v30, %s4625_s28 }
 0x4f5   : > { %1582 = vrot.lane.b32.xlu1 %v4961_v37, %s4625_s28 }
 0x554   : > { %v1342_v33 = vpop.xlane.xlu0 %1341 }
 0x555   : > { %4432 = vrcp.f32 %v1342_v33 }
 0x558   : > { %v1352_v36 = vpop.permute.xlu0 %1351 }
 0x559   : > { %4281 = vmatpush3.msra.mxu0 %v1352_v36 }
 0x55a   : > { %4290 = vmatprep.subr.mxu0 %v4622_v20 }
 0x561   : > { %v1333_v38 = vpop.xlane.xlu1 %1332 }
 0x562   : > { %v4433_v39 = vpop.eup %4432  ;;  %v1335_v40 = vsub.f32 %v1324_v29, %v1333_v38 }
 0x563   : > { %v1347_v41 = vmul.f32 %v4433_v39, %v4431_v16 }
 0x564   : > { %v1338_v42 = vmul.f32 1.442695, %v1335_v40 }
 0x565   : > { %4283 = vmatmul.mubr.msk.f32.vlgmr.msra.gmra.mxu0 %vm851_vm5, %v1347_v41  ;;  %v1429_v43 = vpop.permute.xlu1 %1428 }
 0x566   : > { %4434 = vpow2.f32 %v1338_v42  ;;  %4286 = vmatpush3.msra.mxu1 %v1429_v43  ;;  %4292 = vmatprep.mubr.msk.f32.mxu0 %vm4623_vm4, %v4622_v20 }
 0x567   : > { %4295 = vmatprep.subr.mxu1 %v4622_v20 }
 0x569   : > { %v1507_v44 = vpop.permute.xlu1 %1506 }
 0x56a   : > { %4291 = vmatpush3.xpose.msk.msra.mxu0 %vm851_vm5, %v1507_v44 }
 0x56b   : > { %4300 = vmatprep.subr.mxu0 %v4622_v20 }
 0x56d   : > { %v1585_v50 = vpop.permute.xlu1 %1584 }
 0x571   : > { %v1583_v52 = vpop.permute.xlu1 %1582 }
 0x573   : > { %v4435_v45 = vpop.eup %4434 }
 0x574   : > { %v1343_v46 = vsel %vm851_vm5, %v4435_v45, 0.0 }
 0x575   : > { %1344 = vadd.xlane.f32.xlu0 %v1343_v46 }
 0x58b   : > { %1504 = vrot.lane.b32.xlu0 %v4948_v35, %s4625_s28 }
 0x5fe   : > { %v1345_v47 = vpop.xlane.xlu0 %1344 }
 0x5ff   : > { %4436 = vrcp.f32 %v1345_v47 }
 0x602   : > { %v1505_v48 = vpop.permute.xlu0 %1504 }
 0x603   : > { %4293 = vmatmul.mubr.msk.f32.vlgmr.msra.gmra.mxu0 %vm851_vm5, %v1505_v48 }
 0x604   : > { %4302 = vmatprep.mubr.msk.f32.mxu0 %vm4623_vm4, %v4622_v20 }
 0x60c   : > { %v4437_v49 = vpop.eup %4436 }
 0x60d   : > { %v1349_v51 = vmul.f32 %v4437_v49, %v4435_v45 }
 0x60f   : > { %4288 = vmatmul.mubr.msk.f32.vlgmr.msra.gmra.mxu1 %vm851_vm5, %v1349_v51 }
 0x610   : > { %4296 = vmatpush3.xpose.msk.msra.mxu1 %vm851_vm5, %v1585_v50  ;;  %4297 = vmatprep.mubr.msk.f32.mxu1 %vm4623_vm4, %v4622_v20 }
 0x611   : > { %4305 = vmatprep.subr.mxu1 %v4622_v20 }
 0x613   : > { %4298 = vmatmul.mubr.msk.f32.vlgmr.msra.gmra.mxu1 %vm851_vm5, %v1583_v52 }
 0x614   : > { %4307 = vmatprep.mubr.msk.f32.mxu1 %vm4623_vm4, %v4622_v20 }
 0x625   : > { %v5052_v53 = vpop.f32.mrf.mxu0 }
 0x627   : > { %v4284_v54 = vpop.f32.mrf.mxu0 }
 0x6c3   : > { %v1578_v55 = vpop.f32.mrf.mxu0 }
 0x6c4   : > { %v1660_v56 = vsel %vm851_vm5, %v1578_v55, -inf }
 0x6c5   : > { %1661 = vmax.xlane.f32.xlu0 %v1660_v56  ;;  %v4294_v57 = vpop.f32.mrf.mxu0 }
 0x6cf   : > { %v5055_v58 = vpop.f32.mrf.mxu1 }
 0x6d1   : > { %v4289_v59 = vpop.f32.mrf.mxu1 }
 0x6d3   : > { %v1656_v60 = vpop.f32.mrf.mxu1 }
 0x6d4   : > { %v1663_v62 = vsel %vm851_vm5, %v1656_v60, -inf }
 0x6d5   : > { %1664 = vmax.xlane.f32.xlu1 %v1663_v62  ;;  %v4299_v63 = vpop.f32.mrf.mxu1  ;;  %v4082_v62 = vld [vmem:[%s4859_s15 + $0x68] sm:$0xff] }
 0x6d6   : > { %v4081_v63 = vld [vmem:[%s4859_s15 + $0x60] sm:$0xff] }
 0x6e6   : > { %1758 = vrot.lane.b32.xlu1 %v4993_v1, %s4625_s28 }
 0x6ea   : > { %1836 = vrot.lane.b32.xlu1 %v4944_v34, %s4626_s21 }
 0x6ee   : > { %1914 = vrot.lane.b32.xlu1 %v4942_v30, %s4626_s21 }
 0x6f2   : > { %1912 = vrot.lane.b32.xlu1 %v4961_v37, %s4626_s21 }
 0x74e   : > { %v1662_v0 = vpop.xlane.xlu0 %1661 }
 0x74f   : > { %v1666_v3 = vsub.f32 %v1578_v55, %v1662_v0 }
 0x751   : > { %v1668_v4 = vmul.f32 1.442695, %v1666_v3 }
 0x753   : > { %4438 = vpow2.f32 %v1668_v4 }
 0x75e   : > { %v1665_v5 = vpop.xlane.xlu1 %1664 }
 0x75f   : > { %v1667_v30 = vsub.f32 %v1656_v60, %v1665_v5  ;;  %v4083_v60 = vld [vmem:[%s4859_s15 + $0x70] sm:$0xff] }
 0x760   : > { %v4439_v6 = vpop.eup %4438 }
 0x761   : > { %v1672_v7 = vsel %vm851_vm5, %v4439_v6, 0.0  ;;  %v1670_v34 = vmul.f32 1.442695, %v1667_v30 }
 0x762   : > { %1673 = vadd.xlane.f32.xlu0 %v1672_v7  ;;  %v1759_v8 = vpop.permute.xlu1 %1758 }
 0x763   : > { %4306 = vmatpush3.msra.mxu1 %v1759_v8  ;;  %4440 = vpow2.f32 %v1670_v34 }
 0x764   : > { %4315 = vmatprep.subr.mxu1 %v4622_v20 }
 0x766   : > { %v1837_v14 = vpop.permute.xlu1 %1836 }
 0x76a   : > { %v1915_v17 = vpop.permute.xlu1 %1914 }
 0x76e   : > { %v1913_v28 = vpop.permute.xlu1 %1912 }
 0x770   : > { %v4441_v37 = vpop.eup %4440 }
 0x771   : > { %v1675_v9 = vsel %vm851_vm5, %v4441_v37, 0.0 }
 0x778   : > { %1682 = vrot.lane.b32.xlu0 %v4995_v2, %s4625_s28 }
 0x797   : > { %1676 = vadd.xlane.f32.xlu0 %v1675_v9 }
 0x7ad   : > { %1834 = vrot.lane.b32.xlu0 %v4948_v35, %s4626_s21 }
 0x7eb   : > { %v1674_v10 = vpop.xlane.xlu0 %1673 }
 0x7ec   : > { %4442 = vrcp.f32 %v1674_v10 }
 0x7ef   : > { %v1683_v11 = vpop.permute.xlu0 %1682 }
 0x7f0   : > { %4301 = vmatpush3.msra.mxu0 %v1683_v11 }
 0x7f1   : > { %4310 = vmatprep.subr.mxu0 %v4622_v20 }
 0x7f9   : > { %v4443_v12 = vpop.eup %4442 }
 0x7fa   : > { %v1679_v13 = vmul.f32 %v4443_v12, %v4439_v6 }
 0x7fc   : > { %4303 = vmatmul.mubr.msk.f32.vlgmr.msra.gmra.mxu0 %vm851_vm5, %v1679_v13 }
 0x7fd   : > { %4311 = vmatpush3.xpose.msk.msra.mxu0 %vm851_vm5, %v1837_v14  ;;  %4312 = vmatprep.mubr.msk.f32.mxu0 %vm4623_vm4, %v4622_v20 }
 0x7fe   : > { %4320 = vmatprep.subr.mxu0 %v4622_v20 }
 0x820   : > { %v1677_v15 = vpop.xlane.xlu0 %1676 }
 0x821   : > { %4444 = vrcp.f32 %v1677_v15 }
 0x824   : > { %v1835_v35 = vpop.permute.xlu0 %1834 }
 0x825   : > { %4313 = vmatmul.mubr.msk.f32.vlgmr.msra.gmra.mxu0 %vm851_vm5, %v1835_v35 }
 0x826   : > { %4322 = vmatprep.mubr.msk.f32.mxu0 %vm4623_vm4, %v4622_v20 }
 0x82e   : > { %v4445_v16 = vpop.eup %4444 }
 0x82f   : > { %v1681_v26 = vmul.f32 %v4445_v16, %v4441_v37 }
 0x831   : > { %4308 = vmatmul.mubr.msk.f32.vlgmr.msra.gmra.mxu1 %vm851_vm5, %v1681_v26 }
 0x832   : > { %4316 = vmatpush3.xpose.msk.msra.mxu1 %vm851_vm5, %v1915_v17  ;;  %4317 = vmatprep.mubr.msk.f32.mxu1 %vm4623_vm4, %v4622_v20 }
 0x833   : > { %4325 = vmatprep.subr.mxu1 %v4622_v20 }
 0x835   : > { %4318 = vmatmul.mubr.msk.f32.vlgmr.msra.gmra.mxu1 %vm851_vm5, %v1913_v28 }
 0x836   : > { %4327 = vmatprep.mubr.msk.f32.mxu1 %vm4623_vm4, %v4622_v20 }
 0x8bc   : > { %v1754_v29 = vpop.f32.mrf.mxu0 }
 0x8be   : > { %v4304_v31 = vpop.f32.mrf.mxu0 }
 0x8e5   : > { %v1908_v32 = vpop.f32.mrf.mxu0 }
 0x8e6   : > { %v1990_v33 = vsel %vm851_vm5, %v1908_v32, -inf }
 0x8e7   : > { %1991 = vmax.xlane.f32.xlu0 %v1990_v33  ;;  %v4314_v36 = vpop.f32.mrf.mxu0 }
 0x8f1   : > { %v1830_v38 = vpop.f32.mrf.mxu1 }
 0x8f3   : > { %v4309_v39 = vpop.f32.mrf.mxu1 }
 0x8f5   : > { %v1986_v40 = vpop.f32.mrf.mxu1 }
 0x8f6   : > { %v1993_v41 = vsel %vm851_vm5, %v1986_v40, -inf }
 0x8f7   : > { %1994 = vmax.xlane.f32.xlu1 %v1993_v41  ;;  %v4319_v42 = vpop.f32.mrf.mxu1 }
 0x908   : > { %2088 = vrot.lane.b32.xlu1 %v4993_v1, %s4626_s21 }
 0x90c   : > { %2166 = vrot.lane.b32.xlu1 %v5052_v53, %s4627_s19 }
 0x910   : > { %2168 = vrot.lane.b32.xlu1 %v5055_v58, %s4627_s19 }
 0x914   : > { %2176 = vrot.lane.b32.xlu1 %v1830_v38, %s4628_s23 }
 0x970   : > { %v1992_v43 = vpop.xlane.xlu0 %1991 }
 0x971   : > { %v1996_v44 = vsub.f32 %v1908_v32, %v1992_v43  ;;  %v2371_v43 = vld [vmem:[%s4866_s13 + $0x188] sm:$0xff] }
 0x973   : > { %v1998_v45 = vmul.f32 1.442695, %v1996_v44  ;;  %v2373_v44 = vld [vmem:[%s4866_s13 + $0x198] sm:$0xff] }
 0x975   : > { %4446 = vpow2.f32 %v1998_v45  ;;  %v2370_v45 = vld [vmem:[%s4866_s13 + $0x180] sm:$0xff] }
 0x980   : > { %v1995_v46 = vpop.xlane.xlu1 %1994 }
 0x981   : > { %v1997_v47 = vsub.f32 %v1986_v40, %v1995_v46  ;;  %v2372_v46 = vld [vmem:[%s4866_s13 + $0x190] sm:$0xff] }
 0x982   : > { %v4447_v48 = vpop.eup %4446 }
 0x983   : > { %v2000_v49 = vmul.f32 1.442695, %v1997_v47  ;;  %v2002_v50 = vsel %vm851_vm5, %v4447_v48, 0.0  ;;  %v2355_v47 = vld [vmem:[%s4866_s13 + $0x108] sm:$0xff] }
 0x984   : > { %2003 = vadd.xlane.f32.xlu0 %v2002_v50  ;;  %v2089_v51 = vpop.permute.xlu1 %2088  ;;  %v2356_v50 = vld [vmem:[%s4866_s13 + $0x110] sm:$0xff] }
 0x985   : > { %4448 = vpow2.f32 %v2000_v49  ;;  %4326 = vmatpush3.msra.mxu1 %v2089_v51  ;;  %v2354_v49 = vld [vmem:[%s4866_s13 + $0x100] sm:$0xff]  ;;  %v2339_v51 = vld [vmem:[%s4866_s13 + $0x88] sm:$0xff] }
 0x986   : > { %2500 = vmatprep.subr.mxu1 %v2371_v43  ;;  %v2347_v43 = vld [vmem:[%s4866_s13 + $0xc8] sm:$0xff] }
 0x988   : > { %v2167_v6 = vpop.permute.xlu1 %2166 }
 0x989   : > { %v2188_v8 = vsel %vm851_vm5, %v5016_v21, %v2167_v6  ;;  %v5115_v21 = vsub.s32 3, %v4927_v22 }
 0x98b   : > { %v2199_v15 = vrot.slane %v4933_v24, %v5115_v21 }
 0x98c   : > { %v2169_v37 = vpop.permute.xlu1 %2168 }
 0x98d   : > { %v2189_v11 = vsel %vm851_vm5, %v5018_v27, %v2169_v37 }
 0x990   : > { %v2177_v10 = vpop.permute.xlu1 %2176 }
 0x991   : > { %v2192_v12 = vsel %vm2190_vm7, %v2189_v11, %v2177_v10  ;;  %v2374_v11 = vld [vmem:[%s4866_s13 + $0x1a0] sm:$0xff] }
 0x992   : > { %v4449_v1 = vpop.eup %4448 }
 0x993   : > { %v2005_v52 = vsel %vm851_vm5, %v4449_v1, 0.0 }
 0x994   : > { %2006 = vadd.xlane.f32.xlu0 %v2005_v52  ;;  %v2338_v52 = vld [vmem:[%s4866_s13 + $0x80] sm:$0xff] }
 0x9aa   : > { %2012 = vrot.lane.b32.xlu0 %v4995_v2, %s4626_s21  ;;  %v4084_v2 = vld [vmem:[%s4859_s15 + $0x78] sm:$0xff] }
 0x9ae   : > { %2174 = vrot.lane.b32.xlu0 %v1754_v29, %s4628_s23 }
 0xa0d   : > { %v2004_v53 = vpop.xlane.xlu0 %2003 }
 0xa0e   : > { %4450 = vrcp.f32 %v2004_v53  ;;  %v2340_v53 = vld [vmem:[%s4866_s13 + $0x90] sm:$0xff] }
 0xa1b   : > { %v4451_v55 = vpop.eup %4450 }
 0xa1c   : > { %v2009_v57 = vmul.f32 %v4451_v55, %v4447_v48  ;;  %v2357_v48 = vld [vmem:[%s4866_s13 + $0x118] sm:$0xff] }
 0xa1d   : > { %v2007_v54 = vpop.xlane.xlu0 %2006  ;;  %v2325_v55 = vld [vmem:[%s4866_s13 + $0x18] sm:$0xff] }
 0xa1e   : > { %4452 = vrcp.f32 %v2007_v54  ;;  %v2323_v54 = vld [vmem:[%s4866_s13 + $0x8] sm:$0xff] }
 0xa21   : > { %v2013_v56 = vpop.permute.xlu0 %2012 }
 0xa22   : > { %4321 = vmatpush3.msra.mxu0 %v2013_v56  ;;  %v2322_v56 = vld [vmem:[%s4866_s13] sm:$0xff] }
 0xa23   : > { %4323 = vmatmul.mubr.msk.f32.vlgmr.msra.gmra.mxu0 %vm851_vm5, %v2009_v57  ;;  %4330 = vmatprep.subr.mxu0 %v4084_v2  ;;  %v2324_v57 = vld [vmem:[%s4866_s13 + $0x10] sm:$0xff] }
 0xa24   : > { %4331 = vmatpush3.msra.mxu0 %v4084_v2 }
 0xa25   : > { %4332 = vmatprep.subr.mxu0 %v4083_v60  ;;  %v2175_v7 = vpop.permute.xlu0 %2174 }
 0xa26   : > { %4333 = vmatpush3.msra.mxu0 %v4083_v60  ;;  %v2191_v30 = vsel %vm2190_vm7, %v2188_v8, %v2175_v7 }
 0xa27   : > { %4334 = vmatprep.subr.mxu0 %v4082_v62 }
 0xa28   : > { %4335 = vmatpush3.msra.mxu0 %v4082_v62 }
 0xa29   : > { %4336 = vmatprep.subr.mxu0 %v4081_v63 }
 0xa2a   : > { %4337 = vmatpush3.msra.mxu0 %v4081_v63 }
 0xa2b   : > { %v4453_v58 = vpop.eup %4452  ;;  %2577 = vmatprep.subr.mxu0 %v2373_v44  ;;  %v2349_v44 = vld [vmem:[%s4866_s13 + $0xd8] sm:$0xff] }
 0xa2c   : > { %v2011_v59 = vmul.f32 %v4453_v58, %v4449_v1  ;;  %v2341_v1 = vld [vmem:[%s4866_s13 + $0x98] sm:$0xff]  ;;  %v2375_v58 = vld [vmem:[%s4866_s13 + $0x1a8] sm:$0xff] }
 0xa2e   : > { %4328 = vmatmul.mubr.msk.f32.vlgmr.msra.gmra.mxu1 %vm851_vm5, %v2011_v59  ;;  %v2377_v59 = vld [vmem:[%s4866_s13 + $0x1b8] sm:$0xff] }
 0xa2f   : > { %2540 = vmatprep.mubr.f32.mxu1 %v4622_v20  ;;  %2501 = vmatpush1.msra.mxu1 %v2370_v45  ;;  %v2346_v45 = vld [vmem:[%s4866_s13 + $0xc0] sm:$0xff] }
 0xa30   : > { %2502 = vmatprep.subr.mxu1 %v2355_v47  ;;  %v2331_v47 = vld [vmem:[%s4866_s13 + $0x48] sm:$0xff] }
 0xa31   : > { %2503 = vmatpush1.msra.mxu1 %v2354_v49  ;;  %v2330_v49 = vld [vmem:[%s4866_s13 + $0x40] sm:$0xff] }
 0xa32   : > { %2504 = vmatprep.subr.mxu1 %v2339_v51  ;;  %v2383_v51 = vld [vmem:[%s4866_s13 + $0x1e8] sm:$0xff] }
 0xa33   : > { %2505 = vmatpush1.msra.mxu1 %v2338_v52  ;;  %v2382_v52 = vld [vmem:[%s4866_s13 + $0x1e0] sm:$0xff] }
 0xa34   : > { %2506 = vmatprep.subr.mxu1 %v2323_v54  ;;  %v2367_v54 = vld [vmem:[%s4866_s13 + $0x168] sm:$0xff] }
 0xa35   : > { %2507 = vmatpush1.msra.mxu1 %v2322_v56  ;;  %v2366_v56 = vld [vmem:[%s4866_s13 + $0x160] sm:$0xff] }
 0xa36   : > { %2654 = vmatprep.subr.mxu1 %v2375_v58  ;;  %v2351_v58 = vld [vmem:[%s4866_s13 + $0xe8] sm:$0xff] }
 0xae3   : > { %v2084_v0 = vpop.f32.mrf.mxu0 }
 0xae4   : > { %2182 = vrot.lane.b32.xlu0 %v2084_v0, %s4629_s22 }
 0xae5   : > { %v4324_v3 = vpop.f32.mrf.mxu0 }
 0xaee   : > { %v2160_v4 = vpop.f32.mrf.mxu1 }
 0xaef   : > { %2184 = vrot.lane.b32.xlu1 %v2160_v4, %s4629_s22  ;;  %v5144_v4 = vsub.s32 4, %v4927_v22 }
 0xaf0   : > { %v4329_v5 = vpop.f32.mrf.mxu1 }
 0xaf1   : > { %v5147_v5 = vsub.s32 5, %v4927_v22  ;;  %v2313_v6 = vrot.slane %v4933_v24, %v5144_v4 }
 0xaf3   : > { %v2319_v8 = vrot.slane %v4933_v24, %v5147_v5  ;;  %v2358_v24 = vld [vmem:[%s4866_s13 + $0x120] sm:$0xff] }
 0xb56   : > { %v2183_v34 = vpop.permute.xlu0 %2182 }
 0xb57   : > { %v2194_v9 = vsel %vm2193_vm6, %v2191_v30, %v2183_v34 }
 0xb58   : > { %4338 = vmatprep.mubr.msk.f32.mxu0 %vm609_vm3, %v2194_v9 }
 0xb61   : > { %v2185_v13 = vpop.permute.xlu1 %2184 }
 0xb62   : > { %v2195_v14 = vsel %vm2193_vm6, %v2192_v12, %v2185_v13  ;;  %v2376_v12 = vld [vmem:[%s4866_s13 + $0x1b0] sm:$0xff]  ;;  %v2359_v13 = vld [vmem:[%s4866_s13 + $0x128] sm:$0xff] }
 0xb63   : > { %4339 = vmatmul.mubr.msk.f32.vlgmr.msra.gmra.mxu0 %vm609_vm3, %v2195_v14  ;;  %v2361_v14 = vld [vmem:[%s4866_s13 + $0x138] sm:$0xff] }
 0xb64   : > { %2617 = vmatprep.mubr.f32.mxu0 %v4622_v20  ;;  %2578 = vmatpush1.msra.mxu0 %v2372_v46  ;;  %v2348_v46 = vld [vmem:[%s4866_s13 + $0xd0] sm:$0xff] }
 0xb65   : > { %2579 = vmatprep.subr.mxu0 %v2357_v48  ;;  %v2333_v48 = vld [vmem:[%s4866_s13 + $0x58] sm:$0xff] }
 0xb66   : > { %2580 = vmatpush1.msra.mxu0 %v2356_v50  ;;  %v2332_v50 = vld [vmem:[%s4866_s13 + $0x50] sm:$0xff] }
 0xb67   : > { %2581 = vmatprep.subr.mxu0 %v2341_v1  ;;  %v2385_v1 = vld [vmem:[%s4866_s13 + $0x1f8] sm:$0xff] }
 0xb68   : > { %2582 = vmatpush1.msra.mxu0 %v2340_v53  ;;  %v2384_v53 = vld [vmem:[%s4866_s13 + $0x1f0] sm:$0xff] }
 0xb69   : > { %2583 = vmatprep.subr.mxu0 %v2325_v55  ;;  %v2369_v55 = vld [vmem:[%s4866_s13 + $0x178] sm:$0xff] }
 0xb6a   : > { %2584 = vmatpush1.msra.mxu0 %v2324_v57  ;;  %v2368_v57 = vld [vmem:[%s4866_s13 + $0x170] sm:$0xff] }
 0xb6b   : > { %2731 = vmatprep.subr.mxu0 %v2377_v59  ;;  %v2353_v59 = vld [vmem:[%s4866_s13 + $0xf8] sm:$0xff] }
 0xc23   : > { %v4340_v35 = vpop.f32.mrf.mxu0 }
 0xc24   : > { %v2278_v16 = vadd.f32 %v4340_v35, %v2199_v15  ;;  %v2360_v35 = vld [vmem:[%s4866_s13 + $0x130] sm:$0xff] }
 0xc25   : > { %v2272_v17 = vpop.f32.mrf.mxu0 }
 0xc26   : > { %v2273_v26 = vadd.f32 %v2272_v17, %v2199_v15  ;;  %v2282_v28 = vadd.f32 %v2278_v16, %v4912_v19  ;;  %v2343_v17 = vld [vmem:[%s4866_s13 + $0xa8] sm:$0xff] }
 0xc28   : > { %v2286_v27 = vsel %vm609_vm3, %v2282_v28, 0.0  ;;  %v2281_v29 = vadd.f32 %v2273_v26, %v4910_v18  ;;  %v2345_v26 = vld [vmem:[%s4866_s13 + $0xb8] sm:$0xff] }
 0xc29   : > { %2287 = vadd.xlane.f32.xlu1 %v2286_v27  ;;  %v2344_v27 = vld [vmem:[%s4866_s13 + $0xb0] sm:$0xff] }
 0xc2a   : > { %v2283_v31 = vsel %vm609_vm3, %v2281_v29, 0.0 }
 0xc2b   : > { %2284 = vadd.xlane.f32.xlu0 %v2283_v31  ;;  %v2329_v31 = vld [vmem:[%s4866_s13 + $0x38] sm:$0xff] }
 0xcb2   : > { %v2288_v32 = vpop.xlane.xlu1 %2287 }
 0xcb3   : > { %v2291_v33 = vmul.f32 0.03125, %v2288_v32  ;;  %v2326_v32 = vld [vmem:[%s4866_s13 + $0x20] sm:$0xff] }
 0xcb4   : > { %v2285_v36 = vpop.xlane.xlu0 %2284 }
 0xcb5   : > { %v2290_v38 = vmul.f32 0.03125, %v2285_v36  ;;  %v2293_v39 = vsub.f32 %v2282_v28, %v2291_v33  ;;  %v2342_v28 = vld [vmem:[%s4866_s13 + $0xa0] sm:$0xff]  ;;  %v2328_v33 = vld [vmem:[%s4866_s13 + $0x30] sm:$0xff]  ;;  %v2379_v36 = vld [vmem:[%s4866_s13 + $0x1c8] sm:$0xff] }
 0xcb7   : > { %v2292_v40 = vsub.f32 %v2281_v29, %v2290_v38  ;;  %v2295_v18 = vmul.f32 %v2293_v39, %v2293_v39  ;;  %v2327_v29 = vld [vmem:[%s4866_s13 + $0x28] sm:$0xff]  ;;  %v2381_v38 = vld [vmem:[%s4866_s13 + $0x1d8] sm:$0xff] }
 0xcb9   : > { %v2294_v19 = vmul.f32 %v2292_v40, %v2292_v40  ;;  %v2299_v42 = vsel %vm609_vm3, %v2295_v18, 0.0  ;;  %v2362_v18 = vld [vmem:[%s4866_s13 + $0x140] sm:$0xff] }
 0xcbb   : > { %v2296_v41 = vsel %vm609_vm3, %v2294_v19, 0.0  ;;  %v2363_v19 = vld [vmem:[%s4866_s13 + $0x148] sm:$0xff] }
 0xcbc   : > { %2297 = vadd.xlane.f32.xlu0 %v2296_v41  ;;  %v2365_v41 = vld [vmem:[%s4866_s13 + $0x158] sm:$0xff] }
 0xcc0   : > { %2300 = vadd.xlane.f32.xlu0 %v2299_v42  ;;  %v2364_v42 = vld [vmem:[%s4866_s13 + $0x150] sm:$0xff] }
 0xd45   : > { %v2298_v2 = vpop.xlane.xlu0 %2297 }
 0xd46   : > { %v2302_v60 = vmul.f32 0.03125, %v2298_v2  ;;  %v2350_v2 = vld [vmem:[%s4866_s13 + $0xe0] sm:$0xff] }
 0xd48   : > { %v2304_v62 = vadd.f32 1e-05, %v2302_v60  ;;  %v2352_v60 = vld [vmem:[%s4866_s13 + $0xf0] sm:$0xff] }
 0xd49   : > { %v2301_v63 = vpop.xlane.xlu0 %2300 }
 0xd4a   : > { %4454 = vrsqrt.f32 %v2304_v62  ;;  %v2303_v0 = vmul.f32 0.03125, %v2301_v63  ;;  %v2335_v62 = vld [vmem:[%s4866_s13 + $0x68] sm:$0xff]  ;;  %v2337_v63 = vld [vmem:[%s4866_s13 + $0x78] sm:$0xff] }
 0xd4c   : > { %v2305_v3 = vadd.f32 1e-05, %v2303_v0  ;;  %v2334_v0 = vld [vmem:[%s4866_s13 + $0x60] sm:$0xff] }
 0xd4e   : > { %4456 = vrsqrt.f32 %v2305_v3  ;;  %v2336_v3 = vld [vmem:[%s4866_s13 + $0x70] sm:$0xff] }
 0xd57   : > { %v4455_v7 = vpop.eup %4454 }
 0xd58   : > { %v2308_v30 = vmul.f32 %v4455_v7, %v2292_v40  ;;  %v2380_v40 = vld [vmem:[%s4866_s13 + $0x1d0] sm:$0xff]  ;;  %v3175_v7 = vld [vmem:[%s4884_s27 + $0x198] sm:$0xff] }
 0xd5a   : > { %v2314_v34 = vmul.f32 %v2313_v6, %v2308_v30  ;;  %v3174_v30 = vld [vmem:[%s4884_s27 + $0x190] sm:$0xff] }
 0xd5b   : > { %v4457_v37 = vpop.eup %4456 }
 0xd5c   : > { %v5153_v9 = vadd.f32 %v2319_v8, %v2314_v34  ;;  %v2309_v10 = vmul.f32 %v4457_v37, %v2293_v39  ;;  %v2378_v39 = vld [vmem:[%s4866_s13 + $0x1c0] sm:$0xff]  ;;  %v3157_v34 = vld [vmem:[%s4884_s27 + $0x108] sm:$0xff]  ;;  %v3159_v37 = vld [vmem:[%s4884_s27 + $0x118] sm:$0xff] }
 0xd5e   : > { %v2315_v15 = vmul.f32 %v2313_v6, %v2309_v10  ;;  %4117 = vmatmul.mubr.msk.f32.vlgmr.msra.gmra.mxu1 %vm609_vm3, %v5153_v9  ;;  %4119 = vmatmul.mubr.msk.f32.vlgmr.msra.gmra.mxu0 %vm609_vm3, %v5153_v9  ;;  %v3173_v6 = vld [vmem:[%s4884_s27 + $0x188] sm:$0xff]  ;;  %v3156_v10 = vld [vmem:[%s4884_s27 + $0x100] sm:$0xff] }
 0xd5f   : > { %2655 = vmatpush1.msra.mxu1 %v2374_v11  ;;  %2732 = vmatpush1.msra.mxu0 %v2376_v12  ;;  %v3158_v11 = vld [vmem:[%s4884_s27 + $0x110] sm:$0xff]  ;;  %v3143_v12 = vld [vmem:[%s4884_s27 + $0x98] sm:$0xff] }
 0xd60   : > { %v5165_v16 = vadd.f32 %v2319_v8, %v2315_v15  ;;  %2656 = vmatprep.subr.mxu1 %v2359_v13  ;;  %2733 = vmatprep.subr.mxu0 %v2361_v14  ;;  %v3172_v8 = vld [vmem:[%s4884_s27 + $0x180] sm:$0xff]  ;;  %v3142_v14 = vld [vmem:[%s4884_s27 + $0x90] sm:$0xff]  ;;  %v3125_v15 = vld [vmem:[%s4884_s27 + $0x8] sm:$0xff] }
 0xd61   : > { %2546 = vmatprep.mubr.f32.mxu1 %v4622_v20  ;;  %2623 = vmatprep.mubr.f32.mxu0 %v4622_v20  ;;  %v3140_v13 = vld [vmem:[%s4884_s27 + $0x80] sm:$0xff] }
 0xd62   : > { %2657 = vmatpush1.msra.mxu1 %v2358_v24  ;;  %2734 = vmatpush1.msra.mxu0 %v2360_v35  ;;  %v3127_v24 = vld [vmem:[%s4884_s27 + $0x18] sm:$0xff]  ;;  %v3124_v35 = vld [vmem:[%s4884_s27] sm:$0xff] }
 0xd63   : > { %4118 = vmatmul.mubr.msk.f32.gmra.mxu1 %vm609_vm3, %v5165_v16  ;;  %4120 = vmatmul.mubr.msk.f32.gmra.mxu0 %vm609_vm3, %v5165_v16 }
 0xd64   : > { %2658 = vmatprep.subr.mxu1 %v2343_v17  ;;  %2735 = vmatprep.subr.mxu0 %v2345_v26  ;;  %v3126_v17 = vld [vmem:[%s4884_s27 + $0x10] sm:$0xff]  ;;  %v3177_v26 = vld [vmem:[%s4884_s27 + $0x1a8] sm:$0xff] }
 0xd65   : > { %2659 = vmatpush1.msra.mxu1 %v2342_v28  ;;  %2736 = vmatpush1.msra.mxu0 %v2344_v27  ;;  %v3179_v28 = vld [vmem:[%s4884_s27 + $0x1b8] sm:$0xff]  ;;  %v5268_v27 = vld [vmem:[%s4882_s26] sm:$0xff] }
 0xd66   : > { %2660 = vmatprep.subr.mxu1 %v2327_v29  ;;  %2737 = vmatprep.subr.mxu0 %v2329_v31  ;;  %v2393_v29 = vrot.slane %v5268_v27, %v4936_v25  ;;  %v2401_v31 = vrot.slane %v5268_v27, %v4989_v61 }
 0xd67   : > { %2661 = vmatpush1.msra.mxu1 %v2326_v32  ;;  %2694 = vmatprep.mubr.f32.mxu1 %v4622_v20  ;;  %v2397_v32 = vrot.slane %v5268_v27, %v4930_v23 }
 0xd68   : > { %2738 = vmatpush1.msra.mxu0 %v2328_v33  ;;  %2771 = vmatprep.mubr.f32.mxu0 %v4622_v20  ;;  %v2405_v33 = vrot.slane %v5268_v27, %v5115_v21 }
 0xd69   : > { %4121 = vmatmul.mubr.msk.f32.vlgmr.msra.gmra.mxu1 %vm609_vm3, %v5153_v9  ;;  %4123 = vmatmul.mubr.msk.f32.vlgmr.msra.gmra.mxu0 %vm609_vm3, %v5153_v9 }
 0xd6a   : > { %2808 = vmatprep.subr.mxu1 %v2379_v36  ;;  %2885 = vmatprep.subr.mxu0 %v2381_v38 }
 0xd6b   : > { %2809 = vmatpush1.msra.mxu1 %v2378_v39  ;;  %2886 = vmatpush1.msra.mxu0 %v2380_v40 }
 0xd6c   : > { %2810 = vmatprep.subr.mxu1 %v2363_v19  ;;  %2887 = vmatprep.subr.mxu0 %v2365_v41 }
 0xd6d   : > { %2700 = vmatprep.mubr.f32.mxu1 %v4622_v20  ;;  %2777 = vmatprep.mubr.f32.mxu0 %v4622_v20 }
 0xd6e   : > { %2811 = vmatpush1.msra.mxu1 %v2362_v18  ;;  %2888 = vmatpush1.msra.mxu0 %v2364_v42 }
 0xd6f   : > { %4122 = vmatmul.mubr.msk.f32.gmra.mxu1 %vm609_vm3, %v5165_v16  ;;  %4124 = vmatmul.mubr.msk.f32.gmra.mxu0 %vm609_vm3, %v5165_v16 }
 0xd70   : > { %2812 = vmatprep.subr.mxu1 %v2347_v43  ;;  %2889 = vmatprep.subr.mxu0 %v2349_v44 }
 0xd71   : > { %2813 = vmatpush1.msra.mxu1 %v2346_v45  ;;  %2890 = vmatpush1.msra.mxu0 %v2348_v46 }
 0xd72   : > { %2814 = vmatprep.subr.mxu1 %v2331_v47  ;;  %2891 = vmatprep.subr.mxu0 %v2333_v48 }
 0xd73   : > { %2815 = vmatpush1.msra.mxu1 %v2330_v49  ;;  %2848 = vmatprep.mubr.f32.mxu1 %v4622_v20  ;;  %v3176_v49 = vld [vmem:[%s4884_s27 + $0x1a0] sm:$0xff] }
 0xd74   : > { %2892 = vmatpush1.msra.mxu0 %v2332_v50  ;;  %2925 = vmatprep.mubr.f32.mxu0 %v4622_v20  ;;  %v3178_v50 = vld [vmem:[%s4884_s27 + $0x1b0] sm:$0xff] }
 0xd75   : > { %4125 = vmatmul.mubr.msk.f32.vlgmr.msra.gmra.mxu1 %vm609_vm3, %v5153_v9  ;;  %4127 = vmatmul.mubr.msk.f32.vlgmr.msra.gmra.mxu0 %vm609_vm3, %v5153_v9 }
 0xd76   : > { %2962 = vmatprep.subr.mxu1 %v2383_v51  ;;  %3039 = vmatprep.subr.mxu0 %v2385_v1  ;;  %v5281_v51 = vsub.s32 7, %v4927_v22 }
 0xd77   : > { %2963 = vmatpush1.msra.mxu1 %v2382_v52  ;;  %3040 = vmatpush1.msra.mxu0 %v2384_v53 }
 0xd78   : > { %2964 = vmatprep.subr.mxu1 %v2367_v54  ;;  %3041 = vmatprep.subr.mxu0 %v2369_v55  ;;  %v3161_v55 = vld [vmem:[%s4884_s27 + $0x128] sm:$0xff] }
 0xd79   : > { %2854 = vmatprep.mubr.f32.mxu1 %v4622_v20  ;;  %2931 = vmatprep.mubr.f32.mxu0 %v4622_v20 }
 0xd7a   : > { %2965 = vmatpush1.msra.mxu1 %v2366_v56  ;;  %3042 = vmatpush1.msra.mxu0 %v2368_v57  ;;  %v3163_v56 = vld [vmem:[%s4884_s27 + $0x138] sm:$0xff] }
 0xd7b   : > { %4126 = vmatmul.mubr.msk.f32.gmra.mxu1 %vm609_vm3, %v5165_v16  ;;  %4128 = vmatmul.mubr.msk.f32.gmra.mxu0 %vm609_vm3, %v5165_v16 }
 0xd7c   : > { %2966 = vmatprep.subr.mxu1 %v2351_v58  ;;  %3043 = vmatprep.subr.mxu0 %v2353_v59 }
 0xd7d   : > { %2967 = vmatpush1.msra.mxu1 %v2350_v2  ;;  %3044 = vmatpush1.msra.mxu0 %v2352_v60  ;;  %v2413_v60 = vrot.slane %v5268_v27, %v5147_v5 }
 0xd7e   : > { %2968 = vmatprep.subr.mxu1 %v2335_v62  ;;  %3045 = vmatprep.subr.mxu0 %v2337_v63  ;;  %v2421_v62 = vrot.slane %v5268_v27, %v5281_v51 }
 0xd7f   : > { %2969 = vmatpush1.msra.mxu1 %v2334_v0  ;;  %3002 = vmatprep.mubr.f32.mxu1 %v4622_v20 }
 0xd80   : > { %3046 = vmatpush1.msra.mxu0 %v2336_v3  ;;  %3079 = vmatprep.mubr.f32.mxu0 %v4622_v20 }
 0xd81   : > { %4129 = vmatmul.mubr.msk.f32.vlgmr.msra.gmra.mxu1 %vm609_vm3, %v5153_v9  ;;  %4131 = vmatmul.mubr.msk.f32.vlgmr.msra.gmra.mxu0 %vm609_vm3, %v5153_v9 }
 0xd82   : > { %3008 = vmatprep.mubr.f32.mxu1 %v4622_v20  ;;  %3085 = vmatprep.mubr.f32.mxu0 %v4622_v20  ;;  %v3141_v20 = vld [vmem:[%s4884_s27 + $0x88] sm:$0xff] }
 0xd83   : > { %3216 = vmatprep.subr.mxu1 %v3173_v6  ;;  %3291 = vmatprep.subr.mxu0 %v3175_v7  ;;  %v3160_v7 = vld [vmem:[%s4884_s27 + $0x120] sm:$0xff] }
 0xd84   : > { %3217 = vmatpush1.xpose.msra.mxu1 %v3172_v8  ;;  %3292 = vmatpush1.xpose.msra.mxu0 %v3174_v30  ;;  %v3162_v8 = vld [vmem:[%s4884_s27 + $0x130] sm:$0xff]  ;;  %v5292_v30 = vsub.s32 6, %v4927_v22  ;;  %v2409_v22 = vrot.slane %v5268_v27, %v5144_v4 }
 0xd85   : > { %4130 = vmatmul.mubr.msk.f32.gmra.mxu1 %vm609_vm3, %v5165_v16  ;;  %4132 = vmatmul.mubr.msk.f32.gmra.mxu0 %vm609_vm3, %v5165_v16 }
 0xd86   : > { %3218 = vmatprep.subr.mxu1 %v3157_v34  ;;  %3293 = vmatprep.subr.mxu0 %v3159_v37  ;;  %v3145_v34 = vld [vmem:[%s4884_s27 + $0xa8] sm:$0xff]  ;;  %v3147_v37 = vld [vmem:[%s4884_s27 + $0xb8] sm:$0xff] }
 0xd88   : > { %3219 = vmatpush1.xpose.msra.mxu1 %v3156_v10  ;;  %3294 = vmatpush1.xpose.msra.mxu0 %v3158_v11 }
 0xd89   : > { %3220 = vmatprep.subr.mxu1 %v3141_v20  ;;  %3295 = vmatprep.subr.mxu0 %v3143_v12 }
 0xd8c   : > { %3221 = vmatpush1.xpose.msra.mxu1 %v3140_v13  ;;  %3296 = vmatpush1.xpose.msra.mxu0 %v3142_v14  ;;  %v2417_v13 = vrot.slane %v5268_v27, %v5292_v30 }
 0xd8d   : > { %3222 = vmatprep.subr.mxu1 %v3125_v15  ;;  %3297 = vmatprep.subr.mxu0 %v3127_v24  ;;  %v3144_v24 = vld [vmem:[%s4884_s27 + $0xa0] sm:$0xff] }
 0xd90   : > { %3223 = vmatpush1.xpose.msra.mxu1 %v3124_v35  ;;  %3298 = vmatpush1.xpose.msra.mxu0 %v3126_v17  ;;  %v3146_v35 = vld [vmem:[%s4884_s27 + $0xb0] sm:$0xff] }
 0xd91   : > { %3366 = vmatprep.subr.mxu1 %v3177_v26  ;;  %3441 = vmatprep.subr.mxu0 %v3179_v28  ;;  %v3129_v28 = vld [vmem:[%s4884_s27 + $0x28] sm:$0xff] }
 0xe1e   : > { %v2542_v36 = vpop.f32.mrf.mxu1  ;;  %v2619_v38 = vpop.f32.mrf.mxu0 }
 0xe1f   : > { %v2543_v39 = vadd.f32 %v2542_v36, %v2393_v29  ;;  %v2620_v40 = vadd.f32 %v2619_v38, %v2401_v31  ;;  %v3128_v36 = vld [vmem:[%s4884_s27 + $0x20] sm:$0xff]  ;;  %v3130_v38 = vld [vmem:[%s4884_s27 + $0x30] sm:$0xff] }
 0xe20   : > { %v2544_v19 = vpop.f32.mrf.mxu1  ;;  %v2621_v41 = vpop.f32.mrf.mxu0 }
 0xe21   : > { %v2545_v18 = vadd.f32 %v2544_v19, %v2397_v32  ;;  %v2622_v42 = vadd.f32 %v2621_v41, %v2405_v33  ;;  %v3092_v47 = vmax.f32 %v2543_v39, 0.0  ;;  %v3094_v48 = vmax.f32 %v2620_v40, 0.0  ;;  %v5307_v19 = vld [vmem:[%s4882_s26 + $0x8] sm:$0xff]  ;;  %v3181_v41 = vld [vmem:[%s4884_s27 + $0x1c8] sm:$0xff] }
 0xe23   : > { %v3093_v43 = vmax.f32 %v2545_v18, 0.0  ;;  %v3095_v44 = vmax.f32 %v2622_v42, 0.0  ;;  %v2548_v45 = vpop.f32.mrf.mxu1  ;;  %v2625_v46 = vpop.f32.mrf.mxu0  ;;  %v3183_v18 = vld [vmem:[%s4884_s27 + $0x1d8] sm:$0xff]  ;;  %v5313_v42 = vrot.slane %v5307_v19, %v4930_v23 }
 0xe24   : > { %v2549_v1 = vadd.f32 %v2548_v45, %v2393_v29  ;;  %v2626_v52 = vadd.f32 %v2625_v46, %v2401_v31  ;;  %v3131_v29 = vld [vmem:[%s4884_s27 + $0x38] sm:$0xff] }
 0xe25   : > { %v2550_v53 = vpop.f32.mrf.mxu1  ;;  %v2627_v54 = vpop.f32.mrf.mxu0  ;;  %3256 = vmatprep.mubr.f32.mxu1 %v3093_v43  ;;  %3331 = vmatprep.mubr.f32.mxu0 %v3095_v44  ;;  %v5317_v43 = vrot.slane %v5307_v19, %v5115_v21  ;;  %v3182_v21 = vld [vmem:[%s4884_s27 + $0x1d0] sm:$0xff] }
 0xe26   : > { %v2551_v57 = vadd.f32 %v2550_v53, %v2397_v32  ;;  %v2628_v58 = vadd.f32 %v2627_v54, %v2405_v33  ;;  %3257 = vmatmul.mubr.f32.vlgmr.msra.gmra.mxu1 %v3092_v47  ;;  %3332 = vmatmul.mubr.f32.vlgmr.msra.gmra.mxu0 %v3094_v48  ;;  %v3108_v63 = vmax.f32 %v2549_v1, 0.0  ;;  %v3110_v0 = vmax.f32 %v2626_v52, 0.0  ;;  %v3180_v53 = vld [vmem:[%s4884_s27 + $0x1c0] sm:$0xff] }
 0xe27   : > { %3367 = vmatpush1.xpose.msra.mxu1 %v3176_v49  ;;  %3442 = vmatpush1.xpose.msra.mxu0 %v3178_v50 }
 0xe28   : > { %v3109_v59 = vmax.f32 %v2551_v57, 0.0  ;;  %v3111_v2 = vmax.f32 %v2628_v58, 0.0  ;;  %3368 = vmatprep.subr.mxu1 %v3161_v55  ;;  %3443 = vmatprep.subr.mxu0 %v3163_v56  ;;  %v3165_v56 = vld [vmem:[%s4884_s27 + $0x148] sm:$0xff]  ;;  %v3167_v57 = vld [vmem:[%s4884_s27 + $0x158] sm:$0xff] }
 0xe29   : > { %v2696_v3 = vpop.f32.mrf.mxu1  ;;  %v2773_v6 = vpop.f32.mrf.mxu0 }
 0xe2a   : > { %3261 = vmatprep.mubr.f32.mxu1 %v3109_v59  ;;  %3336 = vmatprep.mubr.f32.mxu0 %v3111_v2  ;;  %v2697_v27 = vadd.f32 %v2696_v3, %v2409_v22  ;;  %v2774_v33 = vadd.f32 %v2773_v6, %v2417_v13  ;;  %v3166_v3 = vld [vmem:[%s4884_s27 + $0x150] sm:$0xff]  ;;  %v3149_v6 = vld [vmem:[%s4884_s27 + $0xc8] sm:$0xff] }
 0xe2b   : > { %v2698_v10 = vpop.f32.mrf.mxu1  ;;  %v2775_v11 = vpop.f32.mrf.mxu0  ;;  %3262 = vmatmul.mubr.f32.gmra.mxu1 %v3108_v63  ;;  %3337 = vmatmul.mubr.f32.gmra.mxu0 %v3110_v0  ;;  %v3164_v0 = vld [vmem:[%s4884_s27 + $0x140] sm:$0xff] }
 0xe2c   : > { %v2699_v20 = vadd.f32 %v2698_v10, %v2413_v60  ;;  %v2776_v12 = vadd.f32 %v2775_v11, %v2421_v62  ;;  %3369 = vmatpush1.xpose.msra.mxu1 %v3160_v7  ;;  %3444 = vmatpush1.xpose.msra.mxu0 %v3162_v8  ;;  %v3096_v46 = vmax.f32 %v2697_v27, 0.0  ;;  %v3098_v47 = vmax.f32 %v2774_v33, 0.0  ;;  %v3151_v7 = vld [vmem:[%s4884_s27 + $0xd8] sm:$0xff]  ;;  %v3148_v11 = vld [vmem:[%s4884_s27 + $0xc0] sm:$0xff] }
 0xe2d   : > { %3370 = vmatprep.subr.mxu1 %v3145_v34  ;;  %3445 = vmatprep.subr.mxu0 %v3147_v37  ;;  %v2425_v37 = vrot.slane %v5307_v19, %v4936_v25  ;;  %v2433_v10 = vrot.slane %v5307_v19, %v4989_v61  ;;  %v3132_v61 = vld [vmem:[%s4884_s27 + $0x40] sm:$0xff] }
 0xe2e   : > { %v3097_v14 = vmax.f32 %v2699_v20, 0.0  ;;  %v3099_v15 = vmax.f32 %v2776_v12, 0.0  ;;  %v3150_v20 = vld [vmem:[%s4884_s27 + $0xd0] sm:$0xff]  ;;  %v3133_v12 = vld [vmem:[%s4884_s27 + $0x48] sm:$0xff] }
 0xe2f   : > { %v2702_v17 = vpop.f32.mrf.mxu1  ;;  %v2779_v26 = vpop.f32.mrf.mxu0 }
 0xe30   : > { %3406 = vmatprep.mubr.f32.mxu1 %v3097_v14  ;;  %3481 = vmatprep.mubr.f32.mxu0 %v3099_v15  ;;  %v2703_v48 = vadd.f32 %v2702_v17, %v2409_v22  ;;  %v2780_v49 = vadd.f32 %v2779_v26, %v2417_v13  ;;  %v3135_v22 = vld [vmem:[%s4884_s27 + $0x58] sm:$0xff]  ;;  %v5347_v26 = vrot.slane %v5307_v19, %v5147_v5 }
 0xe31   : > { %v2704_v31 = vpop.f32.mrf.mxu1  ;;  %v2781_v32 = vpop.f32.mrf.mxu0  ;;  %3371 = vmatpush1.xpose.msra.mxu1 %v3144_v24  ;;  %3446 = vmatpush1.xpose.msra.mxu0 %v3146_v35  ;;  %v3134_v24 = vld [vmem:[%s4884_s27 + $0x50] sm:$0xff] }
 0xe32   : > { %3372 = vmatprep.subr.mxu1 %v3129_v28  ;;  %3447 = vmatprep.subr.mxu0 %v3131_v29  ;;  %v2705_v39 = vadd.f32 %v2704_v31, %v2413_v60  ;;  %v2782_v40 = vadd.f32 %v2781_v32, %v2421_v62  ;;  %v3112_v58 = vmax.f32 %v2703_v48, 0.0  ;;  %v3114_v59 = vmax.f32 %v2780_v49, 0.0  ;;  %v3185_v29 = vld [vmem:[%s4884_s27 + $0x1e8] sm:$0xff]  ;;  %v3187_v31 = vld [vmem:[%s4884_s27 + $0x1f8] sm:$0xff] }
 0xe33   : > { %v5351_v28 = vrot.slane %v5307_v19, %v5281_v51 }
 0xe34   : > { %v3113_v23 = vmax.f32 %v2705_v39, 0.0  ;;  %v3115_v50 = vmax.f32 %v2782_v40, 0.0 }
 0xe35   : > { %v2850_v44 = vpop.f32.mrf.mxu1  ;;  %v2927_v45 = vpop.f32.mrf.mxu0  ;;  %3373 = vmatpush1.xpose.msra.mxu1 %v3128_v36  ;;  %3448 = vmatpush1.xpose.msra.mxu0 %v3130_v38 }
 0xe36   : > { %3516 = vmatprep.subr.mxu1 %v3181_v41  ;;  %3591 = vmatprep.subr.mxu0 %v3183_v18  ;;  %v2851_v25 = vadd.f32 %v2850_v44, %v2425_v37  ;;  %v2928_v15 = vadd.f32 %v2927_v45, %v2433_v10  ;;  %v3169_v44 = vld [vmem:[%s4884_s27 + $0x168] sm:$0xff]  ;;  %v3171_v45 = vld [vmem:[%s4884_s27 + $0x178] sm:$0xff] }
 0xe37   : > { %v2852_v1 = vpop.f32.mrf.mxu1  ;;  %v2929_v52 = vpop.f32.mrf.mxu0 }
 0xe38   : > { %v2853_v54 = vadd.f32 %v2852_v1, %v5313_v42  ;;  %v2930_v55 = vadd.f32 %v2929_v52, %v5317_v43  ;;  %3407 = vmatmul.mubr.f32.vlgmr.msra.gmra.mxu1 %v3096_v46  ;;  %3482 = vmatmul.mubr.f32.vlgmr.msra.gmra.mxu0 %v3098_v47  ;;  %v3100_v33 = vmax.f32 %v2851_v25, 0.0  ;;  %v3102_v36 = vmax.f32 %v2928_v15, 0.0  ;;  %v3153_v1 = vld [vmem:[%s4884_s27 + $0xe8] sm:$0xff]  ;;  %v3155_v52 = vld [vmem:[%s4884_s27 + $0xf8] sm:$0xff] }
 0xe39   : > { %3411 = vmatprep.mubr.f32.mxu1 %v3113_v23  ;;  %3486 = vmatprep.mubr.f32.mxu0 %v3115_v50  ;;  %v3168_v23 = vld [vmem:[%s4884_s27 + $0x160] sm:$0xff]  ;;  %v3170_v50 = vld [vmem:[%s4884_s27 + $0x170] sm:$0xff] }
 0xe3a   : > { %3517 = vmatpush1.xpose.msra.mxu1 %v3180_v53  ;;  %3592 = vmatpush1.xpose.msra.mxu0 %v3182_v21  ;;  %v3101_v2 = vmax.f32 %v2853_v54, 0.0  ;;  %v3103_v60 = vmax.f32 %v2930_v55, 0.0  ;;  %v2441_v54 = vrot.slane %v5307_v19, %v5144_v4  ;;  %v2449_v55 = vrot.slane %v5307_v19, %v5292_v30  ;;  %v3136_v4 = vld [vmem:[%s4884_s27 + $0x60] sm:$0xff] }
 0xe3b   : > { %v2856_v62 = vpop.f32.mrf.mxu1  ;;  %v2933_v63 = vpop.f32.mrf.mxu0  ;;  %3518 = vmatprep.subr.mxu1 %v3165_v56  ;;  %3593 = vmatprep.subr.mxu0 %v3167_v57  ;;  %v3152_v56 = vld [vmem:[%s4884_s27 + $0xe0] sm:$0xff]  ;;  %v3154_v57 = vld [vmem:[%s4884_s27 + $0xf0] sm:$0xff] }
 0xe3c   : > { %3412 = vmatmul.mubr.f32.gmra.mxu1 %v3112_v58  ;;  %3487 = vmatmul.mubr.f32.gmra.mxu0 %v3114_v59  ;;  %v2857_v38 = vadd.f32 %v2856_v62, %v2425_v37  ;;  %v2934_v39 = vadd.f32 %v2933_v63, %v2433_v10  ;;  %v3137_v58 = vld [vmem:[%s4884_s27 + $0x68] sm:$0xff]  ;;  %v3139_v59 = vld [vmem:[%s4884_s27 + $0x78] sm:$0xff] }
 0xe3d   : > { %v2858_v8 = vpop.f32.mrf.mxu1  ;;  %v2935_v34 = vpop.f32.mrf.mxu0  ;;  %3556 = vmatprep.mubr.f32.mxu1 %v3101_v2  ;;  %3631 = vmatprep.mubr.f32.mxu0 %v3103_v60 }
 0xe3e   : > { %3519 = vmatpush1.xpose.msra.mxu1 %v3164_v0  ;;  %3594 = vmatpush1.xpose.msra.mxu0 %v3166_v3  ;;  %v2859_v35 = vadd.f32 %v2858_v8, %v5313_v42  ;;  %v2936_v17 = vadd.f32 %v2935_v34, %v5317_v43  ;;  %v3184_v42 = vld [vmem:[%s4884_s27 + $0x1e0] sm:$0xff]  ;;  %v3186_v43 = vld [vmem:[%s4884_s27 + $0x1f0] sm:$0xff]  ;;  %v3116_v46 = vmax.f32 %v2857_v38, 0.0  ;;  %v3118_v47 = vmax.f32 %v2934_v39, 0.0 }
 0xe3f   : > { %3520 = vmatprep.subr.mxu1 %v3149_v6  ;;  %3595 = vmatprep.subr.mxu0 %v3151_v7  ;;  %v3138_v0 = vld [vmem:[%s4884_s27 + $0x70] sm:$0xff] }
 0xe40   : > { %v3117_v5 = vmax.f32 %v2859_v35, 0.0  ;;  %v3119_v40 = vmax.f32 %v2936_v17, 0.0 }
 0xe41   : > { %v5337_v13 = vpop.f32.mrf.mxu1  ;;  %v5339_v14 = vpop.f32.mrf.mxu0 }
 0xe42   : > { %3521 = vmatpush1.xpose.msra.mxu1 %v3148_v11  ;;  %3596 = vmatpush1.xpose.msra.mxu0 %v3150_v20  ;;  %v3005_v62 = vadd.f32 %v5337_v13, %v2441_v54  ;;  %v3082_v63 = vadd.f32 %v5339_v14, %v2449_v55 }
 0xe43   : > { %3522 = vmatprep.subr.mxu1 %v3133_v12  ;;  %3597 = vmatprep.subr.mxu0 %v3135_v22  ;;  %v3006_v32 = vpop.f32.mrf.mxu1  ;;  %v3083_v27 = vpop.f32.mrf.mxu0 }
 0xe44   : > { %v3007_v41 = vadd.f32 %v3006_v32, %v5347_v26  ;;  %v3084_v18 = vadd.f32 %v3083_v27, %v5351_v28  ;;  %v3104_v6 = vmax.f32 %v3005_v62, 0.0  ;;  %v3106_v7 = vmax.f32 %v3082_v63, 0.0 }
 0xe45   : > { %v3010_v53 = vpop.f32.mrf.mxu1  ;;  %v3087_v21 = vpop.f32.mrf.mxu0 }
 0xe46   : > { %3523 = vmatpush1.xpose.msra.mxu1 %v3132_v61  ;;  %3598 = vmatpush1.xpose.msra.mxu0 %v3134_v24  ;;  %v3105_v48 = vmax.f32 %v3007_v41, 0.0  ;;  %v3107_v49 = vmax.f32 %v3084_v18, 0.0  ;;  %v3011_v8 = vadd.f32 %v3010_v53, %v2441_v54  ;;  %v3088_v34 = vadd.f32 %v3087_v21, %v2449_v55 }
 0xe47   : > { %3666 = vmatprep.subr.mxu1 %v3185_v29  ;;  %3741 = vmatprep.subr.mxu0 %v3187_v31  ;;  %v3012_v2 = vpop.f32.mrf.mxu1  ;;  %v3089_v60 = vpop.f32.mrf.mxu0 }
 0xe48   : > { %v3013_v19 = vadd.f32 %v3012_v2, %v5347_v26  ;;  %v3090_v3 = vadd.f32 %v3089_v60, %v5351_v28  ;;  %v3120_v11 = vmax.f32 %v3011_v8, 0.0  ;;  %v3122_v20 = vmax.f32 %v3088_v34, 0.0 }
 0xe49   : > { %3557 = vmatmul.mubr.f32.vlgmr.msra.gmra.mxu1 %v3100_v33  ;;  %3632 = vmatmul.mubr.f32.vlgmr.msra.gmra.mxu0 %v3102_v36  ;;  %v4133_v33 = vld [vmem:[%s4877_s30 + $0x8] ss:$0 sm:$0xff] }
 0xe4a   : > { %3561 = vmatprep.mubr.f32.mxu1 %v3117_v5  ;;  %3636 = vmatprep.mubr.f32.mxu0 %v3119_v40  ;;  %v3121_v37 = vmax.f32 %v3013_v19, 0.0  ;;  %v3123_v10 = vmax.f32 %v3090_v3, 0.0 }
 0xe4b   : > { %3667 = vmatpush1.xpose.msra.mxu1 %v3184_v42  ;;  %3742 = vmatpush1.xpose.msra.mxu0 %v3186_v43 }
 0xe4c   : > { %3668 = vmatprep.subr.mxu1 %v3169_v44  ;;  %3743 = vmatprep.subr.mxu0 %v3171_v45 }
 0xe4d   : > { %3562 = vmatmul.mubr.f32.gmra.mxu1 %v3116_v46  ;;  %3637 = vmatmul.mubr.f32.gmra.mxu0 %v3118_v47 }
 0xe4e   : > { %3706 = vmatprep.mubr.f32.mxu1 %v3105_v48  ;;  %3781 = vmatprep.mubr.f32.mxu0 %v3107_v49 }
 0xe4f   : > { %3669 = vmatpush1.xpose.msra.mxu1 %v3168_v23  ;;  %3744 = vmatpush1.xpose.msra.mxu0 %v3170_v50 }
 0xe50   : > { %3670 = vmatprep.subr.mxu1 %v3153_v1  ;;  %3745 = vmatprep.subr.mxu0 %v3155_v52 }
 0xe53   : > { %3671 = vmatpush1.xpose.msra.mxu1 %v3152_v56  ;;  %3746 = vmatpush1.xpose.msra.mxu0 %v3154_v57 }
 0xe54   : > { %3672 = vmatprep.subr.mxu1 %v3137_v58  ;;  %3747 = vmatprep.subr.mxu0 %v3139_v59 }
 0xe57   : > { %3673 = vmatpush1.xpose.msra.mxu1 %v3136_v4  ;;  %3748 = vmatpush1.xpose.msra.mxu0 %v3138_v0 }
 0xe5a   : > { %3707 = vmatmul.mubr.f32.vlgmr.msra.gmra.mxu1 %v3104_v6  ;;  %3782 = vmatmul.mubr.f32.vlgmr.msra.gmra.mxu0 %v3106_v7 }
 0xe5b   : > { %3711 = vmatprep.mubr.f32.mxu1 %v3121_v37  ;;  %3786 = vmatprep.mubr.f32.mxu0 %v3123_v10 }
 0xe5e   : > { %3712 = vmatmul.mubr.f32.gmra.mxu1 %v3120_v11  ;;  %3787 = vmatmul.mubr.f32.gmra.mxu0 %v3122_v20 }
 0xee6   : > { %v3258_v12 = vpop.f32.mrf.mxu1  ;;  %v3333_v22 = vpop.f32.mrf.mxu0 }
 0xee7   : > { %v3259_v36 = vadd.f32 %v4133_v33, %v3258_v12 }
 0xee8   : > { %v3260_v13 = vpop.f32.mrf.mxu1  ;;  %v3335_v14 = vpop.f32.mrf.mxu0 }
 0xee9   : > { %v3334_v41 = vadd.f32 %v3333_v22, %v3259_v36 }
 0xeeb   : > { %v3263_v25 = vpop.f32.mrf.mxu1  ;;  %v3338_v15 = vpop.f32.mrf.mxu0 }
 0xeec   : > { %v3264_v18 = vadd.f32 %v4133_v33, %v3263_v25 }
 0xeed   : > { %v3265_v61 = vpop.f32.mrf.mxu1  ;;  %v3340_v24 = vpop.f32.mrf.mxu0 }
 0xeee   : > { %v3339_v47 = vadd.f32 %v3338_v15, %v3264_v18  ;;  %v4462_v24 = vld [vmem:[%s4877_s30] sm:$0xff] }
 0xef8   : > { %v3408_v35 = vpop.f32.mrf.mxu1  ;;  %v3483_v17 = vpop.f32.mrf.mxu0 }
 0xef9   : > { %v3409_v44 = vadd.f32 %v3408_v35, %v3334_v41  ;;  %v3823_v35 = vrot.slane %v4462_v24, %v5292_v30 }
 0xefa   : > { %v3410_v26 = vpop.f32.mrf.mxu1  ;;  %v3485_v28 = vpop.f32.mrf.mxu0 }
 0xefb   : > { %v3484_v48 = vadd.f32 %v3483_v17, %v3409_v44  ;;  %v3829_v26 = vrot.slane %v4462_v24, %v5281_v51 }
 0xefc   : > { %v3413_v29 = vpop.f32.mrf.mxu1  ;;  %v3488_v31 = vpop.f32.mrf.mxu0 }
 0xefd   : > { %v3414_v49 = vadd.f32 %v3413_v29, %v3339_v47 }
 0xefe   : > { %v3415_v32 = vpop.f32.mrf.mxu1  ;;  %v3490_v27 = vpop.f32.mrf.mxu0 }
 0xeff   : > { %v3489_v50 = vadd.f32 %v3488_v31, %v3414_v49 }
 0xf09   : > { %v3558_v38 = vpop.f32.mrf.mxu1  ;;  %v3633_v39 = vpop.f32.mrf.mxu0 }
 0xf0a   : > { %v3559_v23 = vadd.f32 %v3558_v38, %v3484_v48 }
 0xf0b   : > { %v3560_v5 = vpop.f32.mrf.mxu1  ;;  %v3635_v40 = vpop.f32.mrf.mxu0 }
 0xf0c   : > { %v3634_v1 = vadd.f32 %v3633_v39, %v3559_v23 }
 0xf0d   : > { %v3563_v42 = vpop.f32.mrf.mxu1  ;;  %v3638_v43 = vpop.f32.mrf.mxu0 }
 0xf0e   : > { %v3564_v52 = vadd.f32 %v3563_v42, %v3489_v50 }
 0xf0f   : > { %v3565_v45 = vpop.f32.mrf.mxu1  ;;  %v3640_v46 = vpop.f32.mrf.mxu0 }
 0xf10   : > { %v3639_v57 = vadd.f32 %v3638_v43, %v3564_v52 }
 0xf1a   : > { %v3708_v53 = vpop.f32.mrf.mxu1  ;;  %v3783_v21 = vpop.f32.mrf.mxu0 }
 0xf1b   : > { %v3709_v54 = vadd.f32 %v3708_v53, %v3634_v1 }
 0xf1c   : > { %v3710_v55 = vpop.f32.mrf.mxu1  ;;  %v3785_v56 = vpop.f32.mrf.mxu0 }
 0xf1d   : > { %v3784_v58 = vadd.f32 %v3783_v21, %v3709_v54 }
 0xf1e   : > { %v3713_v59 = vpop.f32.mrf.mxu1  ;;  %v3788_v2 = vpop.f32.mrf.mxu0 }
 0xf1f   : > { %v3714_v60 = vadd.f32 %v3713_v59, %v3639_v57  ;;  %v3792_v62 = vadd.f32 %v3784_v58, %v5153_v9 }
 0xf20   : > { %v3715_v63 = vpop.f32.mrf.mxu1  ;;  %v3790_v4 = vpop.f32.mrf.mxu0 }
 0xf21   : > { %v3789_v0 = vadd.f32 %v3788_v2, %v3714_v60  ;;  %v3794_v19 = vsel %vm609_vm3, %v3792_v62, 0.0 }
 0xf22   : > { %3795 = vadd.xlane.f32.xlu0 %v3794_v19 }
 0xf23   : > { %v3793_v3 = vadd.f32 %v3789_v0, %v5165_v16 }
 0xf25   : > { %v3797_v6 = vsel %vm609_vm3, %v3793_v3, 0.0 }
 0xf26   : > { %3798 = vadd.xlane.f32.xlu1 %v3797_v6 }
 0xfab   : > { %v3796_v7 = vpop.xlane.xlu0 %3795 }
 0xfac   : > { %v3800_v8 = vmul.f32 0.03125, %v3796_v7 }
 0xfae   : > { %v3802_v34 = vsub.f32 %v3792_v62, %v3800_v8 }
 0xfaf   : > { %v3799_v37 = vpop.xlane.xlu1 %3798 }
 0xfb0   : > { %v3801_v10 = vmul.f32 0.03125, %v3799_v37  ;;  %v3804_v11 = vmul.f32 %v3802_v34, %v3802_v34 }
 0xfb2   : > { %v3803_v20 = vsub.f32 %v3793_v3, %v3801_v10  ;;  %v3806_v9 = vsel %vm609_vm3, %v3804_v11, 0.0 }
 0xfb3   : > { %3807 = vadd.xlane.f32.xlu0 %v3806_v9 }
 0xfb4   : > { %v3805_v12 = vmul.f32 %v3803_v20, %v3803_v20 }
 0xfb6   : > { %v3809_v22 = vsel %vm609_vm3, %v3805_v12, 0.0 }
 0xfb7   : > { %3810 = vadd.xlane.f32.xlu1 %v3809_v22 }
0x103c   : > { %v3808_v13 = vpop.xlane.xlu0 %3807 }
0x103d   : > { %v3812_v16 = vmul.f32 0.03125, %v3808_v13 }
0x103f   : > { %v3814_v14 = vadd.f32 1e-05, %v3812_v16 }
0x1040   : > { %v3811_v25 = vpop.xlane.xlu1 %3810 }
0x1041   : > { %4458 = vrsqrt.f32 %v3814_v14  ;;  %v3813_v15 = vmul.f32 0.03125, %v3811_v25 }
0x1043   : > { %v3815_v61 = vadd.f32 1e-05, %v3813_v15 }
0x1045   : > { %4460 = vrsqrt.f32 %v3815_v61 }
0x104e   : > { %v4459_v17 = vpop.eup %4458 }
0x104f   : > { %v3818_v28 = vmul.f32 %v4459_v17, %v3802_v34 }
0x1051   : > { %v3824_v29 = vmul.f32 %v3823_v35, %v3818_v28 }
0x1052   : > { %v4461_v31 = vpop.eup %4460 }
0x1053   : > { %v3830_v32 = vadd.f32 %v3829_v26, %v3824_v29  ;;  %v3819_v27 = vmul.f32 %v4461_v31, %v3803_v20 }
0x1055   : > { %3832 = vst.msk [vmem:[#allocation2] sm:$0xff] %vm609_vm3, %v3830_v32  ;;  %v3825_v33 = vmul.f32 %v3823_v35, %v3819_v27  ;;  %3837 = sbr.rel (%p4134_p5) target bundleno = 4391 (0x1127), region = 80 }
0x1057   : > { %v3831_v36 = vadd.f32 %v3829_v26, %v3825_v33 }
0x1059   : > { %3833 = vst.msk [vmem:[#allocation2 + $0x8] sm:$0xff] %vm609_vm3, %v3831_v36 }
0x105a   : > { %v3843_v30 = vld [vmem:[%s5441_s8 + $0x18] sm:$0xff]  ;;  %v4630_v38 = vmov 0.0   ;;  %v3842_v51 = vld [vmem:[%s5441_s8 + $0x10] sm:$0xff]  ;;  %vm4631_vm8 = vmmov 0   ;;  %v3841_v39 = vld [vmem:[%s5441_s8 + $0x8] sm:$0xff]  ;;  %vm3924_vm9 = vcmask 25600  }
0x105b   : > { %4341 = vmatprep.subr.mxu0 %v4630_v38  ;;  %4349 = vmatprep.mubr.msk.f32.mxu0 %vm4631_vm8, %v4630_v38  ;;  %v3840_v5 = vld [vmem:[%s5441_s8] sm:$0xff] }
0x105c   : > { %4342 = vmatpush3.msra.mxu0 %v3843_v30  ;;  %v4135_v41 = vld [vmem:[%s5442_s9] ss:$0 sm:$0xff] }
0x105d   : > { %4343 = vmatprep.subr.mxu0 %v4630_v38 }
0x105e   : > { %4344 = vmatpush3.msra.mxu0 %v3842_v51 }
0x105f   : > { %4345 = vmatprep.subr.mxu0 %v4630_v38 }
0x1060   : > { %4346 = vmatpush3.msra.mxu0 %v3841_v39  ;;  %v3839_v40 = vld [vmem:[#allocation2 + $0x7] ss:$8 sm:$0x3] }
0x1061   : > { %4347 = vmatprep.subr.mxu0 %v4630_v38 }
0x1062   : > { %4348 = vmatpush3.msra.mxu0 %v3840_v5 }
0x1063   : > { %4350 = vmatmul.mubr.msk.f32.vlgmr.msra.gmra.mxu0 %vm609_vm3, %v3839_v40 }
0x1123   : > { %v3920_v18 = vpop.f32.mrf.mxu0 }
0x1124   : > { %v3921_v42 = vadd.f32 %v4135_v41, %v3920_v18 }
0x1125   : > { %v4351_v43 = vpop.f32.mrf.mxu0 }
0x1126   : > { %3925 = vst.msk [vmem:[#allocation9] sm:$0x3] %vm3924_vm9, %v3921_v42 }
0x1127 PF: > { %p4373_p6 = scmp.eq.s32.totalorder %s4707_s17, 1  ;;  %s4632_s24 = smov [#allocation9]  }
0x1128   : > { %s3933_s12 = sshll.u32 %s4632_s24, 4  ;;  %s3934_s12 = int_to_ptr.vmem [resolvable:$true] %s3933_s12 }
0x1129   : > { %s4547_s5 = scalar_lea.vmem %s3934_s12, 32  ;;  %p4554_p12 = scmp.lt.s32.totalorder %s3934_s12, %s3934_s12 }
0x112a   : > { %p4548_p9 = scmp.ne.s32.totalorder %s3934_s12, %s4547_s5  ;;  %p4555_p0 = scmp.lt.s32.totalorder %s4547_s5, %s4547_s5 }
0x112c   : > { %p4549_p11 = pnand %p4548_p9, %p4373_p6  ;;  %p4556_p1 = por %p4555_p0, %p4554_p12 }
0x112e   : > { %p4550_p7 = pneg %p4549_p11 }
0x1130   : > { %p4557_p2 = pnand %p4556_p1, %p4550_p7 }
0x1132   : > { %4560 = shalt.err (!%p4557_p2)
}
0x1133   : > { %s5469_s28 = sld [smem:[#allocation17_spill]] }
0x1139   : > { %4359 = dma.vmem_to_hbm [thread:$0]  (%p4373_p6), %s3934_s12, 32, %s5469_s28, [#allocation5]  }
0x113a   : > { %4596 = dma.done.wait (%p4373_p6), [#allocation5], 32  }
0x113b   : > { %4598 = vsyncadd (%p4373_p6), [#allocation5], 4294967264 }
0x113c PF: > { %s5470_s16 = sld [smem:[#allocation14_spill]]  ;;  %s5473_s13 = smov %s4605_s14 }
0x113d   : > { %s5471_s21 = sld [smem:[#allocation13_spill]] }
0x113e   : > { %s5472_s15 = sld [smem:[#allocation15_spill]] }
0x1142   : > { %p24_p3 = scmp.ge.s32.totalorder %s5470_s16, 4  }
0x1143   : > { %s5474_s14 = smov %s5471_s21 }
0x1144   :  { %26 = sbr.rel (!%p24_p3) target bundleno = 9 (0x9), region = 139 }
0x1149   :  { %3946 = vsyncpa [#allocation4], 1 }
0x114a   :  { %3948 = vsyncpa [#allocation4 + $0x1], 1 }
0x114b   :  { %3949 = vsyncpa [#allocation7], 1 }
0x114c   :  { %3951 = vsyncpa [#allocation7 + $0x1], 1 }
0x114d   :  { %3952 = vsyncpa [#allocation5], 1 }
0x114e   :  { %3954 = vsyncpa [#allocation5 + $0x1], 1 }

</bundles_post_ra>
